<compile_context>
chip_gen: v5e
topology: v5e:2x2
jax: 0.10.0
libtpu: 0.0.40
codegen_flags: <defaults>
</compile_context>

<pallas_src>
import jax
import jax.numpy as jnp
from jax.experimental import pallas as pl
from jax.experimental.pallas import tpu as pltpu

LANE = 128  # TPU lane width; pad feature dims to multiples of this.


def _round_up(x, m):
    return (x + m - 1) // m * m


def _tensorcores_per_chip():
    """Best-effort TensorCore count per chip (v7x has 2, v5e/v6e have 1)."""
    try:
        kind = (getattr(jax.devices()[0], "device_kind", "") or "").lower()
        if "v7" in kind:
            return 2
    except Exception:
        pass
    return 1


def _select_batch_tile(B, batch_tile, num_cores):
    """Rows per grid step: 16-aligned (bf16 sublane tile), one step on
    single-TC chips when it fits, >= 2 steps on multi-TC chips."""
    if num_cores >= 2:
        cap = _round_up(pl.cdiv(B, 2), 16)   # both cores get a batch half
    else:
        cap = _round_up(B, 16)               # serial grid: 1 step if it fits
    return max(16, min(_round_up(batch_tile, 16), cap))


# ----------------------------------------------------------------------------
# Fused MLP kernel (all layers share the lane-padded width D)
# ----------------------------------------------------------------------------
def _make_mlp_kernel(relu_flags):
    """relu_flags[i] True -> Linear + ReLU; False -> plain Linear."""
    n_layers = len(relu_flags)

    def kernel(x_ref, w_ref, b_ref, out_ref):
        # x_ref:   (bt, D)    bf16 lane-padded input tile
        # w_ref:   (L, D, D)  bf16 stacked, zero-padded weights
        # b_ref:   (L, 1, D)  f32  stacked, zero-padded biases
        # out_ref: (bt, D)    lane-padded output tile
        h = x_ref[...]                      # bf16 feeds the MXU directly
        for i in range(n_layers):           # unrolled at trace time
            w = w_ref[i]                    # (D, D) bf16, static index
            b = b_ref[i]                    # (1, D) f32
            # MXU matmul bf16 x bf16 -> f32 accumulation; bias add / ReLU in f32
            # (v5e VPU has no bf16 elementwise path).
            acc = jnp.dot(h, w, preferred_element_type=jnp.float32) + b
            if relu_flags[i]:
                acc = jnp.maximum(acc, 0.0)
            if i + 1 < n_layers:
                h = acc.astype(jnp.bfloat16)
            else:
                out_ref[...] = acc.astype(out_ref.dtype)

    return kernel


# ----------------------------------------------------------------------------
# Wrapper
# ----------------------------------------------------------------------------
def ae_forward(x, params, relu_flags, *, batch_tile=1024, out_dtype=jnp.float32):
    """Fused AE (encoder + decoder) MLP as a single pallas_call.

    Args:
      x: (B, input_dim) float32 input.
      params: list of (w, b); w has shape (in, out) (pre-transposed from the
              PyTorch (out, in) convention), b has shape (1, out).
      relu_flags: list[bool], one per layer; True -> ReLU after the Linear.
      batch_tile: requested rows per grid step (auto-capped / 16-aligned).
      out_dtype: jnp.float32 (PyTorch semantics) or jnp.bfloat16 (less HBM traffic).
    Returns:
      (B, params[-1][0].shape[1]) array of dtype out_dtype.
    """
    B, in_dim = x.shape
    L = len(params)
    assert L == len(relu_flags)
    assert params[0][0].shape[0] == in_dim
    out_dim = params[-1][0].shape[1]

    # Common lane-padded feature width for every layer (zero padding keeps the
    # math exact: padded weight rows/cols and bias lanes are zero).
    dmax = max([in_dim] + [w.shape[1] for w, _ in params])
    D = _round_up(dmax, LANE)

    # Stack params into two operands.
    w_list, b_list = [], []
    for w, b in params:
        fi, fo = w.shape
        w_list.append(jnp.pad(w.astype(jnp.bfloat16), ((0, D - fi), (0, D - fo))))
        b_list.append(jnp.pad(b.astype(jnp.float32), ((0, 0), (0, D - fo))))
    w_all = jnp.stack(w_list, axis=0)   # (L, D, D) bf16
    b_all = jnp.stack(b_list, axis=0)   # (L, 1, D) f32

    # Batch tile / grid: no batch zero-pad, ragged last block is masked by Pallas.
    num_cores = _tensorcores_per_chip()
    bt = _select_batch_tile(B, batch_tile, num_cores)
    grid = (pl.cdiv(B, bt),)

    # Lane-pad input only (bf16 for the MXU).
    x_p = jnp.pad(x.astype(jnp.bfloat16), ((0, 0), (0, D - in_dim)))

    out_padded = pl.pallas_call(
        _make_mlp_kernel(tuple(relu_flags)),
        out_shape=jax.ShapeDtypeStruct((B, D), out_dtype),
        grid=grid,
        in_specs=[
            pl.BlockSpec((bt, D), lambda i: (i, 0)),
            # Params: full (padded) arrays every step; constant index_map ->
            # resident in VMEM, no re-DMA per grid step.
            pl.BlockSpec((L, D, D), lambda i: (0, 0, 0)),
            pl.BlockSpec((L, 1, D), lambda i: (0, 0, 0)),
        ],
        out_specs=pl.BlockSpec((bt, D), lambda i: (i, 0)),
        compiler_params=pltpu.CompilerParams(
            dimension_semantics=("parallel",),
            # Explicit VMEM budget; current usage is <4 MiB, this documents the
            # ceiling so scaled-up configs stay safe on v7x's 64 MiB VMEM.
            vmem_limit_bytes=32 * 1024 * 1024,
        ),
    )(x_p, w_all, b_all)

    return out_padded[:, :out_dim]


# ----------------------------------------------------------------------------
# AE layer construction (mirrors the PyTorch Encoder/Decoder/AE __init__)
# ----------------------------------------------------------------------------
def ae_layer_config(input_dim, latent_dim, enc_layer_sizes, dec_layer_sizes):
    """Returns (dims, relu_flags) for the fused encoder+decoder MLP."""
    assert enc_layer_sizes[0] == input_dim
    dims, relu = [], []
    # Encoder hidden: Linear(enc[k], enc[k+1]) + ReLU
    for k in range(len(enc_layer_sizes) - 1):
        dims.append((enc_layer_sizes[k], enc_layer_sizes[k + 1]))
        relu.append(True)
    # Encoder out: Linear(enc[-1], latent_dim), no activation
    dims.append((enc_layer_sizes[-1], latent_dim))
    relu.append(False)
    # Decoder
    if len(dec_layer_sizes) > 1:
        dims.append((latent_dim, dec_layer_sizes[0]))
        relu.append(True)
        for k in range(len(dec_layer_sizes) - 2):
            dims.append((dec_layer_sizes[k], dec_layer_sizes[k + 1]))
            relu.append(True)
        dims.append((dec_layer_sizes[-2], dec_layer_sizes[-1]))
        relu.append(False)
    else:
        dims.append((latent_dim, dec_layer_sizes[-1]))
        relu.append(False)
    return dims, relu


def init_ae_params(key, dims):
    """PyTorch nn.Linear default init (uniform +-1/sqrt(fan_in)).

    Weights stored as (in, out) (pre-transposed from PyTorch's (out, in)),
    biases as (1, out).
    """
    params = []
    for fan_in, fan_out in dims:
        key, kw, kb = jax.random.split(key, 3)
        bound = 1.0 / float(fan_in) ** 0.5
        w = jax.random.uniform(kw, (fan_in, fan_out), jnp.float32, -bound, bound)
        b = jax.random.uniform(kb, (1, fan_out), jnp.float32, -bound, bound)
        params.append((w, b))
    return params


# ----------------------------------------------------------------------------
# References
# ----------------------------------------------------------------------------
def ae_reference_f32(x, params, relu_flags):
    """Pure-JAX f32 reference of the PyTorch AE forward."""
    h = x
    for (w, b), r in zip(params, relu_flags):
        h = h @ w + b
        if r:
            h = jnp.maximum(h, 0.0)
    return h


def ae_reference_bf16(x, params, relu_flags):
    """Reference mirroring the kernel's mixed precision exactly."""
    n = len(params)
    h = x.astype(jnp.bfloat16)
    for i, ((w, b), r) in enumerate(zip(params, relu_flags)):
        acc = jnp.dot(h, w.astype(jnp.bfloat16),
                      preferred_element_type=jnp.float32) + b.astype(jnp.float32)
        if r:
            acc = jnp.maximum(acc, 0.0)
        h = acc.astype(jnp.bfloat16) if i + 1 < n else acc
    return h


if __name__ == "__main__":
    # Small AE config consistent with the module:
    #   input_dim = encoder_layer_sizes[0], reconstruction dim = decoder_layer_sizes[-1]
    input_dim = 48
    latent_dim = 16
    enc_layer_sizes = [48, 64, 32]
    dec_layer_sizes = [32, 64, 48]
    batch = 250  # NOT a multiple of the tile -> exercises the ragged last block

    dims, relu_flags = ae_layer_config(input_dim, latent_dim,
                                       enc_layer_sizes, dec_layer_sizes)

    key = jax.random.PRNGKey(0)
    key, kx = jax.random.split(key)
    x = jax.random.normal(kx, (batch, input_dim), jnp.float32)
    params = init_ae_params(key, dims)

    # TODO(synk): AE.rep / get_rep / set_rep (representative-point parameters)
    # are not used by AE.forward and are omitted here.

    x_rec = ae_forward(x, params, relu_flags, batch_tile=1024)
    x_rec = jax.block_until_ready(x_rec)
    assert x_rec.shape == (batch, dec_layer_sizes[-1])
    assert x_rec.dtype == jnp.float32

    # Exact-semantics check (same bf16/f32 mixed precision as the kernel).
    ref_bf16 = ae_reference_bf16(x, params, relu_flags)
    assert jnp.allclose(x_rec, ref_bf16, atol=2e-3, rtol=2e-3), \
        "mismatch vs bf16-matched reference"

    # Sanity check vs the full-f32 PyTorch-semantics reference (loose tol for bf16).
    ref_f32 = ae_reference_f32(x, params, relu_flags)
    assert jnp.allclose(x_rec, ref_f32, atol=7e-2, rtol=7e-2), \
        "mismatch vs f32 reference"

    print("KERNEL_OK")
</pallas_src>

<mosaic_0001>
module attributes {stable_mosaic.version = 11 : i64} {
  func.func @kernel(%arg0: i32, %arg1: memref<256x128xbf16, #tpu.memory_space<vmem>>, %arg2: memref<6x128x128xbf16, #tpu.memory_space<vmem>>, %arg3: memref<6x1x128xf32, #tpu.memory_space<vmem>>, %arg4: memref<256x128xf32, #tpu.memory_space<vmem>>) attributes {dimension_semantics = [#tpu.dimension_semantics<parallel>], iteration_bounds = array<i64: 1>, scalar_prefetch = 0 : i64, scratch_operands = 0 : i64, tpu.core_type = #tpu.core_type<tc>, window_params = [{transform_indices = @transform_0, window_bounds = array<i64: 256, 128>}, {pipeline_mode = #tpu.pipeline_mode<synchronous>, transform_indices = @transform_1, window_bounds = array<i64: 6, 128, 128>}, {pipeline_mode = #tpu.pipeline_mode<synchronous>, transform_indices = @transform_2, window_bounds = array<i64: 6, 1, 128>}, {transform_indices = @transform_3, window_bounds = array<i64: 256, 128>}]} {
    %c0 = arith.constant 0 : index
    %c0_0 = arith.constant 0 : index
    %0 = vector.load %arg1[%c0, %c0_0] : memref<256x128xbf16, #tpu.memory_space<vmem>>, vector<256x128xbf16>
    %c0_1 = arith.constant 0 : index
    %c0_2 = arith.constant 0 : index
    %c0_3 = arith.constant 0 : index
    %1 = vector.load %arg2[%c0_1, %c0_2, %c0_3] : memref<6x128x128xbf16, #tpu.memory_space<vmem>>, vector<1x128x128xbf16>
    %2 = vector.shape_cast %1 : vector<1x128x128xbf16> to vector<128x128xbf16>
    %c0_4 = arith.constant 0 : index
    %c0_5 = arith.constant 0 : index
    %c0_6 = arith.constant 0 : index
    %3 = vector.load %arg3[%c0_4, %c0_5, %c0_6] : memref<6x1x128xf32, #tpu.memory_space<vmem>>, vector<1x1x128xf32>
    %4 = vector.shape_cast %3 : vector<1x1x128xf32> to vector<1x128xf32>
    %cst = arith.constant dense<0.000000e+00> : vector<256x128xf32>
    %5 = tpu.matmul %0, %2, %cst {dimension_numbers = #tpu.dot_dimension_numbers<[1], [0], [0], [1], [0, 0, 1, 1], [], []>} : vector<256x128xbf16>, vector<128x128xbf16>, vector<256x128xf32> -> vector<256x128xf32>
    %6 = vector.broadcast %4 : vector<1x128xf32> to vector<256x128xf32>
    %7 = arith.addf %5, %6 : vector<256x128xf32>
    %cst_7 = arith.constant 0.000000e+00 : f32
    %8 = vector.broadcast %cst_7 : f32 to vector<256x128xf32>
    %9 = arith.maximumf %7, %8 : vector<256x128xf32>
    %10 = arith.truncf %9 : vector<256x128xf32> to vector<256x128xbf16>
    %c1 = arith.constant 1 : index
    %c0_8 = arith.constant 0 : index
    %c0_9 = arith.constant 0 : index
    %11 = vector.load %arg2[%c1, %c0_8, %c0_9] : memref<6x128x128xbf16, #tpu.memory_space<vmem>>, vector<1x128x128xbf16>
    %12 = vector.shape_cast %11 : vector<1x128x128xbf16> to vector<128x128xbf16>
    %c1_10 = arith.constant 1 : index
    %c0_11 = arith.constant 0 : index
    %c0_12 = arith.constant 0 : index
    %13 = vector.load %arg3[%c1_10, %c0_11, %c0_12] : memref<6x1x128xf32, #tpu.memory_space<vmem>>, vector<1x1x128xf32>
    %14 = vector.shape_cast %13 : vector<1x1x128xf32> to vector<1x128xf32>
    %cst_13 = arith.constant dense<0.000000e+00> : vector<256x128xf32>
    %15 = tpu.matmul %10, %12, %cst_13 {dimension_numbers = #tpu.dot_dimension_numbers<[1], [0], [0], [1], [0, 0, 1, 1], [], []>} : vector<256x128xbf16>, vector<128x128xbf16>, vector<256x128xf32> -> vector<256x128xf32>
    %16 = vector.broadcast %14 : vector<1x128xf32> to vector<256x128xf32>
    %17 = arith.addf %15, %16 : vector<256x128xf32>
    %cst_14 = arith.constant 0.000000e+00 : f32
    %18 = vector.broadcast %cst_14 : f32 to vector<256x128xf32>
    %19 = arith.maximumf %17, %18 : vector<256x128xf32>
    %20 = arith.truncf %19 : vector<256x128xf32> to vector<256x128xbf16>
    %c2 = arith.constant 2 : index
    %c0_15 = arith.constant 0 : index
    %c0_16 = arith.constant 0 : index
    %21 = vector.load %arg2[%c2, %c0_15, %c0_16] : memref<6x128x128xbf16, #tpu.memory_space<vmem>>, vector<1x128x128xbf16>
    %22 = vector.shape_cast %21 : vector<1x128x128xbf16> to vector<128x128xbf16>
    %c2_17 = arith.constant 2 : index
    %c0_18 = arith.constant 0 : index
    %c0_19 = arith.constant 0 : index
    %23 = vector.load %arg3[%c2_17, %c0_18, %c0_19] : memref<6x1x128xf32, #tpu.memory_space<vmem>>, vector<1x1x128xf32>
    %24 = vector.shape_cast %23 : vector<1x1x128xf32> to vector<1x128xf32>
    %cst_20 = arith.constant dense<0.000000e+00> : vector<256x128xf32>
    %25 = tpu.matmul %20, %22, %cst_20 {dimension_numbers = #tpu.dot_dimension_numbers<[1], [0], [0], [1], [0, 0, 1, 1], [], []>} : vector<256x128xbf16>, vector<128x128xbf16>, vector<256x128xf32> -> vector<256x128xf32>
    %26 = vector.broadcast %24 : vector<1x128xf32> to vector<256x128xf32>
    %27 = arith.addf %25, %26 : vector<256x128xf32>
    %28 = arith.truncf %27 : vector<256x128xf32> to vector<256x128xbf16>
    %c3 = arith.constant 3 : index
    %c0_21 = arith.constant 0 : index
    %c0_22 = arith.constant 0 : index
    %29 = vector.load %arg2[%c3, %c0_21, %c0_22] : memref<6x128x128xbf16, #tpu.memory_space<vmem>>, vector<1x128x128xbf16>
    %30 = vector.shape_cast %29 : vector<1x128x128xbf16> to vector<128x128xbf16>
    %c3_23 = arith.constant 3 : index
    %c0_24 = arith.constant 0 : index
    %c0_25 = arith.constant 0 : index
    %31 = vector.load %arg3[%c3_23, %c0_24, %c0_25] : memref<6x1x128xf32, #tpu.memory_space<vmem>>, vector<1x1x128xf32>
    %32 = vector.shape_cast %31 : vector<1x1x128xf32> to vector<1x128xf32>
    %cst_26 = arith.constant dense<0.000000e+00> : vector<256x128xf32>
    %33 = tpu.matmul %28, %30, %cst_26 {dimension_numbers = #tpu.dot_dimension_numbers<[1], [0], [0], [1], [0, 0, 1, 1], [], []>} : vector<256x128xbf16>, vector<128x128xbf16>, vector<256x128xf32> -> vector<256x128xf32>
    %34 = vector.broadcast %32 : vector<1x128xf32> to vector<256x128xf32>
    %35 = arith.addf %33, %34 : vector<256x128xf32>
    %cst_27 = arith.constant 0.000000e+00 : f32
    %36 = vector.broadcast %cst_27 : f32 to vector<256x128xf32>
    %37 = arith.maximumf %35, %36 : vector<256x128xf32>
    %38 = arith.truncf %37 : vector<256x128xf32> to vector<256x128xbf16>
    %c4 = arith.constant 4 : index
    %c0_28 = arith.constant 0 : index
    %c0_29 = arith.constant 0 : index
    %39 = vector.load %arg2[%c4, %c0_28, %c0_29] : memref<6x128x128xbf16, #tpu.memory_space<vmem>>, vector<1x128x128xbf16>
    %40 = vector.shape_cast %39 : vector<1x128x128xbf16> to vector<128x128xbf16>
    %c4_30 = arith.constant 4 : index
    %c0_31 = arith.constant 0 : index
    %c0_32 = arith.constant 0 : index
    %41 = vector.load %arg3[%c4_30, %c0_31, %c0_32] : memref<6x1x128xf32, #tpu.memory_space<vmem>>, vector<1x1x128xf32>
    %42 = vector.shape_cast %41 : vector<1x1x128xf32> to vector<1x128xf32>
    %cst_33 = arith.constant dense<0.000000e+00> : vector<256x128xf32>
    %43 = tpu.matmul %38, %40, %cst_33 {dimension_numbers = #tpu.dot_dimension_numbers<[1], [0], [0], [1], [0, 0, 1, 1], [], []>} : vector<256x128xbf16>, vector<128x128xbf16>, vector<256x128xf32> -> vector<256x128xf32>
    %44 = vector.broadcast %42 : vector<1x128xf32> to vector<256x128xf32>
    %45 = arith.addf %43, %44 : vector<256x128xf32>
    %cst_34 = arith.constant 0.000000e+00 : f32
    %46 = vector.broadcast %cst_34 : f32 to vector<256x128xf32>
    %47 = arith.maximumf %45, %46 : vector<256x128xf32>
    %48 = arith.truncf %47 : vector<256x128xf32> to vector<256x128xbf16>
    %c5 = arith.constant 5 : index
    %c0_35 = arith.constant 0 : index
    %c0_36 = arith.constant 0 : index
    %49 = vector.load %arg2[%c5, %c0_35, %c0_36] : memref<6x128x128xbf16, #tpu.memory_space<vmem>>, vector<1x128x128xbf16>
    %50 = vector.shape_cast %49 : vector<1x128x128xbf16> to vector<128x128xbf16>
    %c5_37 = arith.constant 5 : index
    %c0_38 = arith.constant 0 : index
    %c0_39 = arith.constant 0 : index
    %51 = vector.load %arg3[%c5_37, %c0_38, %c0_39] : memref<6x1x128xf32, #tpu.memory_space<vmem>>, vector<1x1x128xf32>
    %52 = vector.shape_cast %51 : vector<1x1x128xf32> to vector<1x128xf32>
    %cst_40 = arith.constant dense<0.000000e+00> : vector<256x128xf32>
    %53 = tpu.matmul %48, %50, %cst_40 {dimension_numbers = #tpu.dot_dimension_numbers<[1], [0], [0], [1], [0, 0, 1, 1], [], []>} : vector<256x128xbf16>, vector<128x128xbf16>, vector<256x128xf32> -> vector<256x128xf32>
    %54 = vector.broadcast %52 : vector<1x128xf32> to vector<256x128xf32>
    %55 = arith.addf %53, %54 : vector<256x128xf32>
    %c0_41 = arith.constant 0 : index
    %c0_42 = arith.constant 0 : index
    %56 = vector.load %arg4[%c0_41, %c0_42] : memref<256x128xf32, #tpu.memory_space<vmem>>, vector<256x128xf32>
    tpu.vector_store %arg4[%c0_41, %c0_42], %55 {strides = array<i32>} : memref<256x128xf32, #tpu.memory_space<vmem>>, vector<256x128xf32>,
    return
  }
  func.func @transform_0(%arg0: i32) -> (i32, i32) {
    %c0_i32 = arith.constant 0 : i32
    %c0_i32_0 = arith.constant 0 : i32
    return %arg0, %c0_i32 : i32, i32
  }
  func.func @transform_1(%arg0: i32) -> (i32, i32, i32) {
    %c0_i32 = arith.constant 0 : i32
    %c0_i32_0 = arith.constant 0 : i32
    %c0_i32_1 = arith.constant 0 : i32
    %c0_i32_2 = arith.constant 0 : i32
    return %c0_i32, %c0_i32_0, %c0_i32_1 : i32, i32, i32
  }
  func.func @transform_2(%arg0: i32) -> (i32, i32, i32) {
    %c0_i32 = arith.constant 0 : i32
    %c0_i32_0 = arith.constant 0 : i32
    %c0_i32_1 = arith.constant 0 : i32
    %c0_i32_2 = arith.constant 0 : i32
    return %c0_i32, %c0_i32_0, %c0_i32_1 : i32, i32, i32
  }
  func.func @transform_3(%arg0: i32) -> (i32, i32) {
    %c0_i32 = arith.constant 0 : i32
    %c0_i32_0 = arith.constant 0 : i32
    return %arg0, %c0_i32 : i32, i32
  }
}

</mosaic_0001>

<bundles_post_ra>
// kernel: tpu_custom_call.1
= control target key start
LH: loop header
LB: loop body
LE: loop exit
PB: predicated region body
PF: predicated region fallthrough
CT: control target
= control target key end

     0   :  { %8 = vsyncpa [#allocation3], 0  ;;  %s2102_s0 = inlined_call_operand.hbm [shape: bf16[250,128], index: 0, kind: input, shape index: {}]   ;;  %s2103_s1 = inlined_call_operand.hbm [shape: bf16[6,128,128], index: 1, kind: input, shape index: {}]   ;;  %s2104_s2 = inlined_call_operand.hbm [shape: f32[6,1,128], index: 2, kind: input, shape index: {}]   ;;  %s2105_s3 = inlined_call_operand.hbm [shape: f32[250,128], index: 3, kind: output, shape index: {}]  }
   0x1   :  { %9 = vsyncpa [#allocation6], 0 }
   0x2   :  { %10 = vsyncpa [#allocation4], 0  ;;  %s28_s14 = sshll.u32 %s2103_s1, 4  ;;  %s1856_s15 = smov [#allocation5]   ;;  %s29_s14 = int_to_ptr.hbm [resolvable:$true] %s28_s14 }
   0x3   :  { %s30_s16 = sshll.u32 %s1856_s15, 4  ;;  %s15_s19 = sshll.u32 %s2102_s0, 4  ;;  %s31_s16 = int_to_ptr.vmem [resolvable:$true] %s30_s16  ;;  %s16_s19 = int_to_ptr.hbm [resolvable:$true] %s15_s19 }
   0x4   :  { %s1857_s20 = smov 64   ;;  %s1858_s21 = smov 4  }
   0x5   :  { %36 = dma.hbm_to_vmem [thread:$0]  %s29_s14, 6144, %s31_s16, [#allocation6], %s1857_s20, %s1857_s20, %s1858_s21  }
   0x6   :  { %s1859_s22 = smov [#allocation2]   ;;  %s41_s26 = sshll.u32 %s2104_s2, 4  ;;  %s42_s26 = int_to_ptr.hbm [resolvable:$true] %s41_s26 }
   0x7   :  { %s17_s23 = sshll.u32 %s1859_s22, 4  ;;  %s1860_s1 = smov [#allocation7]   ;;  %s18_s23 = int_to_ptr.vmem [resolvable:$true] %s17_s23 }
   0x8   :  { %23 = dma.hbm_to_vmem [thread:$0]  %s16_s19, 2048, %s18_s23, [#allocation3], %s1857_s20, %s1857_s20, %s1858_s21  }
   0x9   :  { %s43_s27 = sshll.u32 %s1860_s1, 4  ;;  %s1861_s28 = smov 16   ;;  %s44_s27 = int_to_ptr.vmem [resolvable:$true] %s43_s27 }
   0xa   :  { %s1862_s29 = smov 1  }
   0xb   :  { %49 = dma.hbm_to_vmem [thread:$0]  %s42_s26, 96, %s44_s27, [#allocation6], %s1861_s28, %s1861_s28, %s1862_s29  }
   0xc   :  { %1850 = dma.done.wait [#allocation3], 2048  }
   0xd   :  { %1851 = vsyncadd [#allocation3], 4294965248 }
   0xe   :  { %1852 = dma.done.wait [#allocation6], 6240  }
   0xf   :  { %1853 = vsyncadd [#allocation6], 4294961056  ;;  %v1681_v0 = vld [vmem:[#allocation5 + $0x38] sm:$0xff]  ;;  %v1680_v1 = vld [vmem:[#allocation5 + $0x30] sm:$0xff]  ;;  %s1863_s0 = smov [#allocation8]   ;;  %s1388_s5 = sshll.u32 %s2105_s3, 4  ;;  %s1389_s5 = int_to_ptr.hbm [resolvable:$true] %s1388_s5 }
  0x10   :  { %258 = vmatpush.bf16.msra.mxu0 %v1681_v0  ;;  %1722 = vmatpush.bf16.msra.mxu2 %v1681_v0  ;;  %v1679_v2 = vld [vmem:[#allocation5 + $0x28] sm:$0xff]  ;;  %v1678_v3 = vld [vmem:[#allocation5 + $0x20] sm:$0xff]  ;;  %v1677_v4 = vld [vmem:[#allocation5 + $0x18] sm:$0xff]  ;;  %s1386_s2 = sshll.u32 %s1863_s0, 4  ;;  %s1864_s6 = smov 128   ;;  %s1387_s2 = int_to_ptr.vmem [resolvable:$true] %s1386_s2 }
  0x11   :  { %v1676_v5 = vld [vmem:[#allocation5 + $0x10] sm:$0xff]  ;;  %v1675_v6 = vld [vmem:[#allocation5 + $0x8] sm:$0xff]  ;;  %v1674_v7 = vld [vmem:[#allocation5] sm:$0xff]  ;;  %s1865_s7 = smov 8  }
  0x12   :  { %v1658_v8 = vld [vmem:[#allocation2] sm:$0xff]  ;;  %v1659_v9 = vld [vmem:[#allocation2 + $0x8] sm:$0xff]  ;;  %v1660_v10 = vld [vmem:[#allocation2 + $0x10] sm:$0xff] }
  0x13   :  { %v1661_v11 = vld [vmem:[#allocation2 + $0x18] sm:$0xff]  ;;  %v1662_v12 = vld [vmem:[#allocation2 + $0x20] sm:$0xff]  ;;  %v1663_v15 = vld [vmem:[#allocation2 + $0x28] sm:$0xff] }
  0x14   :  { %259 = vmatpush.bf16.msra.mxu0 %v1680_v1  ;;  %1723 = vmatpush.bf16.msra.mxu2 %v1680_v1  ;;  %v1666_v13 = vld [vmem:[#allocation2 + $0x40] sm:$0xff]  ;;  %v1689_v14 = vld [vmem:[#allocation5 + $0x78] sm:$0xff]  ;;  %v1688_v16 = vld [vmem:[#allocation5 + $0x70] sm:$0xff] }
  0x15   :  { %465 = vmatpush.bf16.msra.mxu1 %v1689_v14  ;;  %1730 = vmatpush.bf16.msra.mxu3 %v1689_v14  ;;  %v1667_v17 = vld [vmem:[#allocation2 + $0x48] sm:$0xff]  ;;  %v1686_v19 = vld [vmem:[#allocation5 + $0x60] sm:$0xff]  ;;  %v1685_v20 = vld [vmem:[#allocation5 + $0x58] sm:$0xff] }
  0x16   :  { %v1687_v18 = vld [vmem:[#allocation5 + $0x68] sm:$0xff]  ;;  %v1664_v21 = vld [vmem:[#allocation2 + $0x30] sm:$0xff]  ;;  %v1682_v25 = vld [vmem:[#allocation5 + $0x40] sm:$0xff] }
  0x17   :  { %v1684_v22 = vld [vmem:[#allocation5 + $0x50] sm:$0xff]  ;;  %v1683_v24 = vld [vmem:[#allocation5 + $0x48] sm:$0xff]  ;;  %v1665_v26 = vld [vmem:[#allocation2 + $0x38] sm:$0xff] }
  0x18   :  { %260 = vmatpush.bf16.msra.mxu0 %v1679_v2  ;;  %1724 = vmatpush.bf16.msra.mxu2 %v1679_v2  ;;  %v1668_v23 = vld [vmem:[#allocation2 + $0x50] sm:$0xff]  ;;  %v1669_v27 = vld [vmem:[#allocation2 + $0x58] sm:$0xff]  ;;  %v1895_v30 = vld [vmem:[#allocation7] ss:$0 sm:$0xff] }
  0x19   :  { %466 = vmatpush.bf16.msra.mxu1 %v1688_v16  ;;  %1731 = vmatpush.bf16.msra.mxu3 %v1688_v16  ;;  %v1697_v28 = vld [vmem:[#allocation5 + $0xb8] sm:$0xff]  ;;  %v1670_v31 = vld [vmem:[#allocation2 + $0x60] sm:$0xff]  ;;  %v1696_v37 = vld [vmem:[#allocation5 + $0xb0] sm:$0xff] }
  0x1a   :  { %v1671_v40 = vld [vmem:[#allocation2 + $0x68] sm:$0xff]  ;;  %v1672_v49 = vld [vmem:[#allocation2 + $0x70] sm:$0xff]  ;;  %v1694_v55 = vld [vmem:[#allocation5 + $0xa0] sm:$0xff] }
  0x1b   :  { %v1695_v46 = vld [vmem:[#allocation5 + $0xa8] sm:$0xff]  ;;  %v1673_v58 = vld [vmem:[#allocation2 + $0x78] sm:$0xff] }
  0x1c   :  { %261 = vmatpush.bf16.msra.mxu0 %v1678_v3  ;;  %1725 = vmatpush.bf16.msra.mxu2 %v1678_v3  ;;  %v1693_v0 = vld [vmem:[#allocation5 + $0x98] sm:$0xff] }
  0x1d   :  { %467 = vmatpush.bf16.msra.mxu1 %v1687_v18  ;;  %1732 = vmatpush.bf16.msra.mxu3 %v1687_v18 }
  0x20   :  { %262 = vmatpush.bf16.msra.mxu0 %v1677_v4  ;;  %1726 = vmatpush.bf16.msra.mxu2 %v1677_v4 }
  0x21   :  { %468 = vmatpush.bf16.msra.mxu1 %v1686_v19  ;;  %1733 = vmatpush.bf16.msra.mxu3 %v1686_v19 }
  0x24   :  { %263 = vmatpush.bf16.msra.mxu0 %v1676_v5  ;;  %1727 = vmatpush.bf16.msra.mxu2 %v1676_v5 }
  0x25   :  { %469 = vmatpush.bf16.msra.mxu1 %v1685_v20  ;;  %1734 = vmatpush.bf16.msra.mxu3 %v1685_v20 }
  0x28   :  { %264 = vmatpush.bf16.msra.mxu0 %v1675_v6  ;;  %1728 = vmatpush.bf16.msra.mxu2 %v1675_v6 }
  0x29   :  { %470 = vmatpush.bf16.msra.mxu1 %v1684_v22  ;;  %1735 = vmatpush.bf16.msra.mxu3 %v1684_v22 }
  0x2c   :  { %265 = vmatpush.bf16.msra.mxu0 %v1674_v7  ;;  %1729 = vmatpush.bf16.msra.mxu2 %v1674_v7 }
  0x2d   :  { %471 = vmatpush.bf16.msra.mxu1 %v1683_v24  ;;  %1736 = vmatpush.bf16.msra.mxu3 %v1683_v24  ;;  %v1691_v24 = vld [vmem:[#allocation5 + $0x88] sm:$0xff] }
  0x2f   :  { %266 = vmatmul.bf16.vlgmr.msra.gmra.mxu0 %v1658_v8  ;;  %306 = vmatmul.bf16.vlgmr.msra.gmra.mxu2 %v1666_v13 }
  0x30   :  { %672 = vmatpush.bf16.msrb.mxu2 %v1697_v28 }
  0x31   :  { %472 = vmatpush.bf16.msra.mxu1 %v1682_v25  ;;  %1737 = vmatpush.bf16.msra.mxu3 %v1682_v25 }
  0x34   :  { %673 = vmatpush.bf16.msrb.mxu2 %v1696_v37 }
  0x38   :  { %674 = vmatpush.bf16.msrb.mxu2 %v1695_v46 }
  0x3c   :  { %675 = vmatpush.bf16.msrb.mxu2 %v1694_v55 }
  0x3f   :  { %271 = vmatmul.bf16.gmra.mxu0 %v1659_v9  ;;  %311 = vmatmul.bf16.gmra.mxu2 %v1667_v17  ;;  %v1692_v9 = vld [vmem:[#allocation5 + $0x90] sm:$0xff] }
  0x40   :  { %676 = vmatpush.bf16.msrb.mxu2 %v1693_v0 }
  0x44   :  { %677 = vmatpush.bf16.msrb.mxu2 %v1692_v9 }
  0x48   :  { %678 = vmatpush.bf16.msrb.mxu2 %v1691_v24 }
  0x4f   :  { %276 = vmatmul.bf16.gmra.mxu0 %v1660_v10  ;;  %316 = vmatmul.bf16.gmra.mxu2 %v1668_v23 }
  0x5f   :  { %281 = vmatmul.bf16.gmra.mxu0 %v1661_v11  ;;  %321 = vmatmul.bf16.gmra.mxu2 %v1669_v27  ;;  %v1690_v27 = vld [vmem:[#allocation5 + $0x80] sm:$0xff] }
  0x60   :  { %679 = vmatpush.bf16.msrb.mxu2 %v1690_v27 }
  0x6f   :  { %286 = vmatmul.bf16.gmra.mxu0 %v1662_v12  ;;  %326 = vmatmul.bf16.gmra.mxu2 %v1670_v31 }
  0x7f   :  { %291 = vmatmul.bf16.gmra.mxu0 %v1663_v15  ;;  %331 = vmatmul.bf16.gmra.mxu2 %v1671_v40 }
  0x8f   :  { %296 = vmatmul.bf16.gmra.mxu0 %v1664_v21  ;;  %336 = vmatmul.bf16.gmra.mxu2 %v1672_v49 }
  0x9f   :  { %301 = vmatmul.bf16.gmra.mxu0 %v1665_v26  ;;  %341 = vmatmul.bf16.gmra.mxu2 %v1673_v58 }
  0xac   :  { %v267_v29 = vpop.f32.mrf.mxu0 }
  0xad   :  { %v268_v32 = vadd.f32 %v1895_v30, %v267_v29 }
  0xaf   :  { %v347_v35 = vmax.f32 %v268_v32, 0.0 }
  0xb2   :  { %v307_v6 = vpop.f32.mrf.mxu2 }
  0xb3   :  { %v308_v11 = vadd.f32 %v1895_v30, %v307_v6 }
  0xb4   :  { %v269_v33 = vpop.f32.mrf.mxu0 }
  0xb5   :  { %v270_v34 = vadd.f32 %v1895_v30, %v269_v33  ;;  %v363_v14 = vmax.f32 %v308_v11, 0.0 }
  0xb7   :  { %v348_v36 = vmax.f32 %v270_v34, 0.0 }
  0xb9   :  { %v379_v38 = vpack.c.bf16 %v348_v36, %v347_v35 }
  0xba   :  { %v309_v13 = vpop.f32.mrf.mxu2 }
  0xbb   :  { %473 = vmatmul.bf16.vlgmr.msra.gmra.mxu1 %v379_v38  ;;  %v310_v15 = vadd.f32 %v1895_v30, %v309_v13 }
  0xbc   :  { %v272_v39 = vpop.f32.mrf.mxu0 }
  0xbd   :  { %v273_v41 = vadd.f32 %v1895_v30, %v272_v39  ;;  %v364_v16 = vmax.f32 %v310_v15, 0.0  ;;  %v1704_v15 = vld [vmem:[#allocation5 + $0xf0] sm:$0xff] }
  0xbf   :  { %v349_v44 = vmax.f32 %v273_v41, 0.0  ;;  %v387_v18 = vpack.c.bf16 %v364_v16, %v363_v14 }
  0xc1   :  { %513 = vmatmul.bf16.vlgmr.msra.gmra.mxu3 %v387_v18 }
  0xc2   :  { %v312_v21 = vpop.f32.mrf.mxu2 }
  0xc3   :  { %v313_v26 = vadd.f32 %v1895_v30, %v312_v21 }
  0xc4   :  { %v274_v42 = vpop.f32.mrf.mxu0 }
  0xc5   :  { %v275_v43 = vadd.f32 %v1895_v30, %v274_v42  ;;  %v365_v31 = vmax.f32 %v313_v26, 0.0 }
  0xc7   :  { %v350_v45 = vmax.f32 %v275_v43, 0.0 }
  0xc9   :  { %v380_v47 = vpack.c.bf16 %v350_v45, %v349_v44 }
  0xca   :  { %v314_v29 = vpop.f32.mrf.mxu2 }
  0xcb   :  { %478 = vmatmul.bf16.gmra.mxu1 %v380_v47  ;;  %v315_v32 = vadd.f32 %v1895_v30, %v314_v29 }
  0xcc   :  { %v277_v48 = vpop.f32.mrf.mxu0 }
  0xcd   :  { %v278_v50 = vadd.f32 %v1895_v30, %v277_v48  ;;  %v366_v33 = vmax.f32 %v315_v32, 0.0 }
  0xcf   :  { %v351_v53 = vmax.f32 %v278_v50, 0.0  ;;  %v388_v35 = vpack.c.bf16 %v366_v33, %v365_v31  ;;  %v1703_v31 = vld [vmem:[#allocation5 + $0xe8] sm:$0xff] }
  0xd1   :  { %518 = vmatmul.bf16.gmra.mxu3 %v388_v35 }
  0xd2   :  { %v317_v38 = vpop.f32.mrf.mxu2 }
  0xd3   :  { %v318_v42 = vadd.f32 %v1895_v30, %v317_v38 }
  0xd4   :  { %v279_v51 = vpop.f32.mrf.mxu0 }
  0xd5   :  { %v280_v52 = vadd.f32 %v1895_v30, %v279_v51  ;;  %v367_v45 = vmax.f32 %v318_v42, 0.0 }
  0xd7   :  { %v352_v54 = vmax.f32 %v280_v52, 0.0 }
  0xd9   :  { %v381_v56 = vpack.c.bf16 %v352_v54, %v351_v53 }
  0xda   :  { %v319_v44 = vpop.f32.mrf.mxu2 }
  0xdb   :  { %483 = vmatmul.bf16.gmra.mxu1 %v381_v56  ;;  %v320_v46 = vadd.f32 %v1895_v30, %v319_v44 }
  0xdc   :  { %v282_v57 = vpop.f32.mrf.mxu0 }
  0xdd   :  { %v283_v59 = vadd.f32 %v1895_v30, %v282_v57  ;;  %v368_v47 = vmax.f32 %v320_v46, 0.0  ;;  %v1702_v46 = vld [vmem:[#allocation5 + $0xe0] sm:$0xff] }
  0xdf   :  { %v353_v62 = vmax.f32 %v283_v59, 0.0  ;;  %v389_v49 = vpack.c.bf16 %v368_v47, %v367_v45 }
  0xe1   :  { %523 = vmatmul.bf16.gmra.mxu3 %v389_v49 }
  0xe2   :  { %v322_v52 = vpop.f32.mrf.mxu2 }
  0xe3   :  { %v323_v56 = vadd.f32 %v1895_v30, %v322_v52 }
  0xe4   :  { %v284_v60 = vpop.f32.mrf.mxu0 }
  0xe5   :  { %v285_v61 = vadd.f32 %v1895_v30, %v284_v60  ;;  %v369_v58 = vmax.f32 %v323_v56, 0.0 }
  0xe7   :  { %v354_v63 = vmax.f32 %v285_v61, 0.0 }
  0xe9   :  { %v382_v1 = vpack.c.bf16 %v354_v63, %v353_v62  ;;  %v1705_v63 = vld [vmem:[#allocation5 + $0xf8] sm:$0xff] }
  0xea   :  { %v324_v57 = vpop.f32.mrf.mxu2  ;;  %847 = vmatpush.bf16.msrb.mxu3 %v1705_v63 }
  0xeb   :  { %488 = vmatmul.bf16.gmra.mxu1 %v382_v1  ;;  %v325_v59 = vadd.f32 %v1895_v30, %v324_v57  ;;  %v1921_v1 = vld [vmem:[#allocation7 + $0x1] ss:$0 sm:$0xff] }
  0xec   :  { %v287_v2 = vpop.f32.mrf.mxu0 }
  0xed   :  { %v288_v3 = vadd.f32 %v1895_v30, %v287_v2  ;;  %v370_v60 = vmax.f32 %v325_v59, 0.0 }
  0xee   :  { %848 = vmatpush.bf16.msrb.mxu3 %v1704_v15 }
  0xef   :  { %v355_v7 = vmax.f32 %v288_v3, 0.0  ;;  %v390_v61 = vpack.c.bf16 %v370_v60, %v369_v58  ;;  %v1701_v60 = vld [vmem:[#allocation5 + $0xd8] sm:$0xff] }
  0xf1   :  { %528 = vmatmul.bf16.gmra.mxu3 %v390_v61 }
  0xf2   :  { %v327_v62 = vpop.f32.mrf.mxu2  ;;  %849 = vmatpush.bf16.msrb.mxu3 %v1703_v31 }
  0xf3   :  { %v328_v2 = vadd.f32 %v1895_v30, %v327_v62 }
  0xf4   :  { %v289_v4 = vpop.f32.mrf.mxu0 }
  0xf5   :  { %v290_v5 = vadd.f32 %v1895_v30, %v289_v4 }
  0xf6   :  { %850 = vmatpush.bf16.msrb.mxu3 %v1702_v46 }
  0xf7   :  { %v356_v8 = vmax.f32 %v290_v5, 0.0  ;;  %v371_v5 = vmax.f32 %v328_v2, 0.0 }
  0xf9   :  { %v383_v10 = vpack.c.bf16 %v356_v8, %v355_v7 }
  0xfa   :  { %v329_v3 = vpop.f32.mrf.mxu2  ;;  %851 = vmatpush.bf16.msrb.mxu3 %v1701_v60 }
  0xfb   :  { %493 = vmatmul.bf16.gmra.mxu1 %v383_v10  ;;  %v330_v6 = vadd.f32 %v1895_v30, %v329_v3 }
  0xfc   :  { %v292_v12 = vpop.f32.mrf.mxu0 }
  0xfd   :  { %v293_v17 = vadd.f32 %v1895_v30, %v292_v12  ;;  %v372_v9 = vmax.f32 %v330_v6, 0.0 }
  0xff   :  { %v357_v22 = vmax.f32 %v293_v17, 0.0  ;;  %v391_v12 = vpack.c.bf16 %v372_v9, %v371_v5 }
 0x101   :  { %533 = vmatmul.bf16.gmra.mxu3 %v391_v12 }
 0x102   :  { %v332_v14 = vpop.f32.mrf.mxu2 }
 0x103   :  { %v333_v17 = vadd.f32 %v1895_v30, %v332_v14 }
 0x104   :  { %v294_v19 = vpop.f32.mrf.mxu0 }
 0x105   :  { %v295_v20 = vadd.f32 %v1895_v30, %v294_v19 }
 0x107   :  { %v358_v23 = vmax.f32 %v295_v20, 0.0  ;;  %v373_v20 = vmax.f32 %v333_v17, 0.0 }
 0x109   :  { %v384_v25 = vpack.c.bf16 %v358_v23, %v357_v22 }
 0x10a   :  { %v334_v18 = vpop.f32.mrf.mxu2 }
 0x10b   :  { %498 = vmatmul.bf16.gmra.mxu1 %v384_v25  ;;  %v335_v21 = vadd.f32 %v1895_v30, %v334_v18 }
 0x10c   :  { %v297_v28 = vpop.f32.mrf.mxu0 }
 0x10d   :  { %v298_v34 = vadd.f32 %v1895_v30, %v297_v28  ;;  %v374_v24 = vmax.f32 %v335_v21, 0.0 }
 0x10f   :  { %v359_v39 = vmax.f32 %v298_v34, 0.0  ;;  %v392_v27 = vpack.c.bf16 %v374_v24, %v373_v20 }
 0x111   :  { %538 = vmatmul.bf16.gmra.mxu3 %v392_v27 }
 0x112   :  { %v337_v29 = vpop.f32.mrf.mxu2 }
 0x113   :  { %v338_v33 = vadd.f32 %v1895_v30, %v337_v29 }
 0x114   :  { %v299_v36 = vpop.f32.mrf.mxu0 }
 0x115   :  { %v300_v37 = vadd.f32 %v1895_v30, %v299_v36  ;;  %v375_v36 = vmax.f32 %v338_v33, 0.0 }
 0x117   :  { %v360_v40 = vmax.f32 %v300_v37, 0.0 }
 0x119   :  { %v385_v41 = vpack.c.bf16 %v360_v40, %v359_v39 }
 0x11a   :  { %v339_v34 = vpop.f32.mrf.mxu2 }
 0x11b   :  { %503 = vmatmul.bf16.gmra.mxu1 %v385_v41  ;;  %v340_v37 = vadd.f32 %v1895_v30, %v339_v34 }
 0x11c   :  { %v302_v43 = vpop.f32.mrf.mxu0 }
 0x11d   :  { %v303_v48 = vadd.f32 %v1895_v30, %v302_v43  ;;  %v376_v40 = vmax.f32 %v340_v37, 0.0 }
 0x11f   :  { %v361_v53 = vmax.f32 %v303_v48, 0.0  ;;  %v393_v43 = vpack.c.bf16 %v376_v40, %v375_v36  ;;  %v1713_v40 = vld [vmem:[#allocation5 + $0x138] sm:$0xff] }
 0x120   :  { %1054 = vmatpush.bf16.msrb.mxu0 %v1713_v40 }
 0x121   :  { %543 = vmatmul.bf16.gmra.mxu3 %v393_v43 }
 0x122   :  { %v342_v45 = vpop.f32.mrf.mxu2 }
 0x123   :  { %v343_v48 = vadd.f32 %v1895_v30, %v342_v45 }
 0x124   :  { %v304_v50 = vpop.f32.mrf.mxu0 }
 0x125   :  { %v305_v51 = vadd.f32 %v1895_v30, %v304_v50 }
 0x127   :  { %v362_v54 = vmax.f32 %v305_v51, 0.0  ;;  %v377_v51 = vmax.f32 %v343_v48, 0.0 }
 0x129   :  { %v386_v55 = vpack.c.bf16 %v362_v54, %v361_v53 }
 0x12a   :  { %v344_v49 = vpop.f32.mrf.mxu2 }
 0x12b   :  { %508 = vmatmul.bf16.gmra.mxu1 %v386_v55  ;;  %v345_v52 = vadd.f32 %v1895_v30, %v344_v49 }
 0x12d   :  { %v378_v55 = vmax.f32 %v345_v52, 0.0 }
 0x12f   :  { %v394_v58 = vpack.c.bf16 %v378_v55, %v377_v51 }
 0x131   :  { %548 = vmatmul.bf16.gmra.mxu3 %v394_v58 }
 0x138   :  { %v474_v0 = vpop.f32.mrf.mxu1 }
 0x139   :  { %v475_v4 = vadd.f32 %v1921_v1, %v474_v0 }
 0x13b   :  { %v554_v10 = vmax.f32 %v475_v4, 0.0  ;;  %v1700_v4 = vld [vmem:[#allocation5 + $0xd0] sm:$0xff] }
 0x13c   :  { %852 = vmatpush.bf16.msrb.mxu3 %v1700_v4 }
 0x140   :  { %v476_v7 = vpop.f32.mrf.mxu1 }
 0x141   :  { %v477_v8 = vadd.f32 %v1921_v1, %v476_v7 }
 0x143   :  { %v555_v11 = vmax.f32 %v477_v8, 0.0 }
 0x145   :  { %v586_v13 = vpack.c.bf16 %v555_v11, %v554_v10  ;;  %v514_v11 = vpop.f32.mrf.mxu3 }
 0x146   :  { %v515_v34 = vadd.f32 %v1921_v1, %v514_v11 }
 0x147   :  { %680 = vmatmul.bf16.vlgmr.msrb.gmra.mxu2 %v586_v13  ;;  %v1699_v13 = vld [vmem:[#allocation5 + $0xc8] sm:$0xff] }
 0x148   :  { %v479_v16 = vpop.f32.mrf.mxu1  ;;  %853 = vmatpush.bf16.msrb.mxu3 %v1699_v13  ;;  %v570_v36 = vmax.f32 %v515_v34, 0.0 }
 0x149   :  { %v480_v19 = vadd.f32 %v1921_v1, %v479_v16 }
 0x14b   :  { %v556_v25 = vmax.f32 %v480_v19, 0.0 }
 0x14d   :  { %v516_v15 = vpop.f32.mrf.mxu3 }
 0x150   :  { %v481_v22 = vpop.f32.mrf.mxu1 }
 0x151   :  { %v482_v23 = vadd.f32 %v1921_v1, %v481_v22  ;;  %v1698_v22 = vld [vmem:[#allocation5 + $0xc0] sm:$0xff] }
 0x152   :  { %854 = vmatpush.bf16.msrb.mxu3 %v1698_v22 }
 0x153   :  { %v557_v26 = vmax.f32 %v482_v23, 0.0 }
 0x155   :  { %v587_v28 = vpack.c.bf16 %v557_v26, %v556_v25  ;;  %v519_v24 = vpop.f32.mrf.mxu3 }
 0x157   :  { %685 = vmatmul.bf16.gmra.mxu2 %v587_v28 }
 0x158   :  { %v484_v32 = vpop.f32.mrf.mxu1 }
 0x159   :  { %v485_v35 = vadd.f32 %v1921_v1, %v484_v32 }
 0x15b   :  { %v558_v41 = vmax.f32 %v485_v35, 0.0  ;;  %v517_v35 = vadd.f32 %v1921_v1, %v516_v15 }
 0x15d   :  { %v521_v28 = vpop.f32.mrf.mxu3  ;;  %v571_v37 = vmax.f32 %v517_v35, 0.0 }
 0x15e   :  { %v522_v43 = vadd.f32 %v1921_v1, %v521_v28 }
 0x160   :  { %v486_v38 = vpop.f32.mrf.mxu1 }
 0x161   :  { %v487_v39 = vadd.f32 %v1921_v1, %v486_v38  ;;  %v594_v38 = vpack.c.bf16 %v571_v37, %v570_v36 }
 0x163   :  { %v559_v42 = vmax.f32 %v487_v39, 0.0 }
 0x165   :  { %v588_v44 = vpack.c.bf16 %v559_v42, %v558_v41  ;;  %v524_v33 = vpop.f32.mrf.mxu3  ;;  %v520_v42 = vadd.f32 %v1921_v1, %v519_v24 }
 0x167   :  { %690 = vmatmul.bf16.gmra.mxu2 %v588_v44  ;;  %v1951_v44 = vld [vmem:[#allocation7 + $0x2] ss:$0 sm:$0xff]  ;;  %v572_v46 = vmax.f32 %v520_v42, 0.0 }
 0x168   :  { %v489_v47 = vpop.f32.mrf.mxu1 }
 0x169   :  { %v490_v50 = vadd.f32 %v1921_v1, %v489_v47  ;;  %v573_v47 = vmax.f32 %v522_v43, 0.0 }
 0x16b   :  { %v560_v56 = vmax.f32 %v490_v50, 0.0  ;;  %v595_v52 = vpack.c.bf16 %v573_v47, %v572_v46 }
 0x16d   :  { %v526_v39 = vpop.f32.mrf.mxu3 }
 0x170   :  { %v491_v53 = vpop.f32.mrf.mxu1 }
 0x171   :  { %v492_v54 = vadd.f32 %v1921_v1, %v491_v53  ;;  %v1712_v53 = vld [vmem:[#allocation5 + $0x130] sm:$0xff] }
 0x172   :  { %1055 = vmatpush.bf16.msrb.mxu0 %v1712_v53 }
 0x173   :  { %v561_v57 = vmax.f32 %v492_v54, 0.0 }
 0x175   :  { %v589_v59 = vpack.c.bf16 %v561_v57, %v560_v56  ;;  %v529_v45 = vpop.f32.mrf.mxu3  ;;  %v525_v56 = vadd.f32 %v1921_v1, %v524_v33  ;;  %v527_v57 = vadd.f32 %v1921_v1, %v526_v39 }
 0x176   :  { %v530_v4 = vadd.f32 %v1921_v1, %v529_v45 }
 0x177   :  { %695 = vmatmul.bf16.gmra.mxu2 %v589_v59  ;;  %v574_v58 = vmax.f32 %v525_v56, 0.0  ;;  %v575_v59 = vmax.f32 %v527_v57, 0.0 }
 0x178   :  { %v494_v61 = vpop.f32.mrf.mxu1 }
 0x179   :  { %v495_v62 = vadd.f32 %v1921_v1, %v494_v61 }
 0x17b   :  { %v562_v2 = vmax.f32 %v495_v62, 0.0 }
 0x17d   :  { %v531_v55 = vpop.f32.mrf.mxu3 }
 0x180   :  { %v496_v63 = vpop.f32.mrf.mxu1 }
 0x181   :  { %v497_v0 = vadd.f32 %v1921_v1, %v496_v63 }
 0x183   :  { %v563_v30 = vmax.f32 %v497_v0, 0.0  ;;  %v596_v0 = vpack.c.bf16 %v575_v59, %v574_v58 }
 0x185   :  { %v590_v3 = vpack.c.bf16 %v563_v30, %v562_v2  ;;  %v534_v63 = vpop.f32.mrf.mxu3  ;;  %v1711_v30 = vld [vmem:[#allocation5 + $0x128] sm:$0xff] }
 0x186   :  { %1056 = vmatpush.bf16.msrb.mxu0 %v1711_v30  ;;  %v1706_v30 = vld [vmem:[#allocation5 + $0x100] sm:$0xff] }
 0x187   :  { %700 = vmatmul.bf16.gmra.mxu2 %v590_v3 }
 0x188   :  { %v499_v5 = vpop.f32.mrf.mxu1 }
 0x189   :  { %v500_v6 = vadd.f32 %v1921_v1, %v499_v5  ;;  %v532_v5 = vadd.f32 %v1921_v1, %v531_v55 }
 0x18b   :  { %v564_v9 = vmax.f32 %v500_v6, 0.0 }
 0x18d   :  { %v536_v6 = vpop.f32.mrf.mxu3 }
 0x190   :  { %v501_v7 = vpop.f32.mrf.mxu1 }
 0x191   :  { %v502_v8 = vadd.f32 %v1921_v1, %v501_v7  ;;  %v576_v7 = vmax.f32 %v530_v4, 0.0 }
 0x193   :  { %v565_v10 = vmax.f32 %v502_v8, 0.0  ;;  %v577_v8 = vmax.f32 %v532_v5, 0.0 }
 0x195   :  { %v591_v12 = vpack.c.bf16 %v565_v10, %v564_v9  ;;  %v539_v15 = vpop.f32.mrf.mxu3 }
 0x197   :  { %705 = vmatmul.bf16.gmra.mxu2 %v591_v12  ;;  %v597_v12 = vpack.c.bf16 %v577_v8, %v576_v7 }
 0x198   :  { %v504_v14 = vpop.f32.mrf.mxu1 }
 0x199   :  { %v505_v16 = vadd.f32 %v1921_v1, %v504_v14  ;;  %v1710_v14 = vld [vmem:[#allocation5 + $0x120] sm:$0xff] }
 0x19a   :  { %1057 = vmatpush.bf16.msrb.mxu0 %v1710_v14 }
 0x19b   :  { %v566_v19 = vmax.f32 %v505_v16, 0.0 }
 0x1a0   :  { %v506_v17 = vpop.f32.mrf.mxu1 }
 0x1a1   :  { %v507_v18 = vadd.f32 %v1921_v1, %v506_v17  ;;  %v535_v17 = vadd.f32 %v1921_v1, %v534_v63 }
 0x1a3   :  { %v567_v20 = vmax.f32 %v507_v18, 0.0  ;;  %v537_v18 = vadd.f32 %v1921_v1, %v536_v6 }
 0x1a5   :  { %v592_v21 = vpack.c.bf16 %v567_v20, %v566_v19  ;;  %v578_v19 = vmax.f32 %v535_v17, 0.0  ;;  %v579_v20 = vmax.f32 %v537_v18, 0.0 }
 0x1a7   :  { %710 = vmatmul.bf16.gmra.mxu2 %v592_v21  ;;  %v541_v21 = vpop.f32.mrf.mxu3 }
 0x1a8   :  { %v509_v23 = vpop.f32.mrf.mxu1 }
 0x1a9   :  { %v510_v25 = vadd.f32 %v1921_v1, %v509_v23 }
 0x1ab   :  { %v568_v29 = vmax.f32 %v510_v25, 0.0  ;;  %v598_v25 = vpack.c.bf16 %v579_v20, %v578_v19 }
 0x1b0   :  { %v511_v26 = vpop.f32.mrf.mxu1 }
 0x1b1   :  { %v512_v27 = vadd.f32 %v1921_v1, %v511_v26 }
 0x1b3   :  { %v569_v31 = vmax.f32 %v512_v27, 0.0  ;;  %v1709_v27 = vld [vmem:[#allocation5 + $0x118] sm:$0xff] }
 0x1b4   :  { %1058 = vmatpush.bf16.msrb.mxu0 %v1709_v27 }
 0x1b5   :  { %v593_v32 = vpack.c.bf16 %v569_v31, %v568_v29  ;;  %v544_v29 = vpop.f32.mrf.mxu3  ;;  %v540_v31 = vadd.f32 %v1921_v1, %v539_v15  ;;  %v1983_v15 = vld [vmem:[#allocation7 + $0x3] ss:$0 sm:$0xff] }
 0x1b6   :  { %v545_v43 = vadd.f32 %v1921_v1, %v544_v29 }
 0x1b7   :  { %715 = vmatmul.bf16.gmra.mxu2 %v593_v32  ;;  %v542_v32 = vadd.f32 %v1921_v1, %v541_v21  ;;  %v580_v33 = vmax.f32 %v540_v31, 0.0 }
 0x1b8   :  { %v582_v47 = vmax.f32 %v545_v43, 0.0 }
 0x1b9   :  { %v581_v34 = vmax.f32 %v542_v32, 0.0 }
 0x1bb   :  { %v599_v39 = vpack.c.bf16 %v581_v34, %v580_v33 }
 0x1bd   :  { %v546_v40 = vpop.f32.mrf.mxu3 }
 0x1be   :  { %v547_v45 = vadd.f32 %v1921_v1, %v546_v40 }
 0x1c5   :  { %v549_v46 = vpop.f32.mrf.mxu3 }
 0x1c6   :  { %v550_v57 = vadd.f32 %v1921_v1, %v549_v46 }
 0x1c7   :  { %720 = vmatmul.bf16.gmra.mxu2 %v594_v38 }
 0x1c8   :  { %v584_v59 = vmax.f32 %v550_v57, 0.0 }
 0x1ca   :  { %v681_v41 = vpop.f32.mrf.mxu2 }
 0x1cb   :  { %v682_v49 = vadd.f32 %v1951_v44, %v681_v41  ;;  %v1708_v41 = vld [vmem:[#allocation5 + $0x110] sm:$0xff] }
 0x1cc   :  { %1059 = vmatpush.bf16.msrb.mxu0 %v1708_v41 }
 0x1cd   :  { %v551_v55 = vpop.f32.mrf.mxu3 }
 0x1ce   :  { %v552_v58 = vadd.f32 %v1921_v1, %v551_v55 }
 0x1d2   :  { %v683_v48 = vpop.f32.mrf.mxu2 }
 0x1d3   :  { %v684_v50 = vadd.f32 %v1951_v44, %v683_v48  ;;  %v583_v48 = vmax.f32 %v547_v45, 0.0 }
 0x1d5   :  { %v761_v51 = vpack.c.bf16 %v684_v50, %v682_v49  ;;  %v600_v53 = vpack.c.bf16 %v583_v48, %v582_v47 }
 0x1d7   :  { %725 = vmatmul.bf16.gmra.mxu2 %v595_v52  ;;  %855 = vmatmul.bf16.vlgmr.msrb.gmra.mxu3 %v761_v51 }
 0x1da   :  { %v686_v54 = vpop.f32.mrf.mxu2 }
 0x1db   :  { %v687_v61 = vadd.f32 %v1951_v44, %v686_v54  ;;  %v1707_v54 = vld [vmem:[#allocation5 + $0x108] sm:$0xff] }
 0x1dc   :  { %1060 = vmatpush.bf16.msrb.mxu0 %v1707_v54  ;;  %v1718_v54 = vld [vmem:[#allocation5 + $0x160] sm:$0xff] }
 0x1e0   :  { %1061 = vmatpush.bf16.msrb.mxu0 %v1706_v30 }
 0x1e2   :  { %v688_v60 = vpop.f32.mrf.mxu2 }
 0x1e3   :  { %v689_v62 = vadd.f32 %v1951_v44, %v688_v60  ;;  %v585_v60 = vmax.f32 %v552_v58, 0.0 }
 0x1e5   :  { %v762_v2 = vpack.c.bf16 %v689_v62, %v687_v61 }
 0x1e7   :  { %730 = vmatmul.bf16.gmra.mxu2 %v596_v0  ;;  %860 = vmatmul.bf16.gmra.mxu3 %v762_v2  ;;  %v601_v2 = vpack.c.bf16 %v585_v60, %v584_v59 }
 0x1ea   :  { %v691_v3 = vpop.f32.mrf.mxu2 }
 0x1eb   :  { %v692_v10 = vadd.f32 %v1951_v44, %v691_v3 }
 0x1f2   :  { %v693_v9 = vpop.f32.mrf.mxu2 }
 0x1f3   :  { %v694_v11 = vadd.f32 %v1951_v44, %v693_v9 }
 0x1f5   :  { %v763_v13 = vpack.c.bf16 %v694_v11, %v692_v10 }
 0x1f7   :  { %735 = vmatmul.bf16.gmra.mxu2 %v597_v12  ;;  %865 = vmatmul.bf16.gmra.mxu3 %v763_v13  ;;  %v1721_v12 = vld [vmem:[#allocation5 + $0x178] sm:$0xff] }
 0x1f8   :  { %1261 = vmatpush.bf16.msrb.mxu1 %v1721_v12 }
 0x1fa   :  { %v696_v16 = vpop.f32.mrf.mxu2 }
 0x1fb   :  { %v697_v23 = vadd.f32 %v1951_v44, %v696_v16 }
 0x202   :  { %v698_v22 = vpop.f32.mrf.mxu2 }
 0x203   :  { %v699_v24 = vadd.f32 %v1951_v44, %v698_v22 }
 0x205   :  { %v764_v26 = vpack.c.bf16 %v699_v24, %v697_v23 }
 0x207   :  { %740 = vmatmul.bf16.gmra.mxu2 %v598_v25  ;;  %870 = vmatmul.bf16.gmra.mxu3 %v764_v26  ;;  %v1720_v25 = vld [vmem:[#allocation5 + $0x170] sm:$0xff] }
 0x208   :  { %1262 = vmatpush.bf16.msrb.mxu1 %v1720_v25 }
 0x20a   :  { %v701_v28 = vpop.f32.mrf.mxu2 }
 0x20b   :  { %v702_v36 = vadd.f32 %v1951_v44, %v701_v28 }
 0x212   :  { %v703_v35 = vpop.f32.mrf.mxu2 }
 0x213   :  { %v704_v37 = vadd.f32 %v1951_v44, %v703_v35 }
 0x215   :  { %v765_v38 = vpack.c.bf16 %v704_v37, %v702_v36 }
 0x217   :  { %745 = vmatmul.bf16.gmra.mxu2 %v599_v39  ;;  %875 = vmatmul.bf16.gmra.mxu3 %v765_v38  ;;  %v1719_v39 = vld [vmem:[#allocation5 + $0x168] sm:$0xff] }
 0x218   :  { %1263 = vmatpush.bf16.msrb.mxu1 %v1719_v39 }
 0x21a   :  { %v706_v42 = vpop.f32.mrf.mxu2 }
 0x21b   :  { %v707_v50 = vadd.f32 %v1951_v44, %v706_v42 }
 0x21c   :  { %1264 = vmatpush.bf16.msrb.mxu1 %v1718_v54 }
 0x222   :  { %v708_v49 = vpop.f32.mrf.mxu2 }
 0x223   :  { %v709_v51 = vadd.f32 %v1951_v44, %v708_v49 }
 0x225   :  { %v766_v52 = vpack.c.bf16 %v709_v51, %v707_v50 }
 0x227   :  { %750 = vmatmul.bf16.gmra.mxu2 %v600_v53  ;;  %880 = vmatmul.bf16.gmra.mxu3 %v766_v52 }
 0x22a   :  { %v711_v56 = vpop.f32.mrf.mxu2 }
 0x22b   :  { %v712_v62 = vadd.f32 %v1951_v44, %v711_v56 }
 0x232   :  { %v713_v61 = vpop.f32.mrf.mxu2 }
 0x233   :  { %v714_v63 = vadd.f32 %v1951_v44, %v713_v61 }
 0x235   :  { %v767_v0 = vpack.c.bf16 %v714_v63, %v712_v62 }
 0x237   :  { %755 = vmatmul.bf16.gmra.mxu2 %v601_v2  ;;  %885 = vmatmul.bf16.gmra.mxu3 %v767_v0 }
 0x23a   :  { %v716_v3 = vpop.f32.mrf.mxu2 }
 0x23b   :  { %v717_v5 = vadd.f32 %v1951_v44, %v716_v3  ;;  %v1717_v3 = vld [vmem:[#allocation5 + $0x158] sm:$0xff] }
 0x23c   :  { %1265 = vmatpush.bf16.msrb.mxu1 %v1717_v3 }
 0x242   :  { %v718_v4 = vpop.f32.mrf.mxu2 }
 0x243   :  { %v719_v6 = vadd.f32 %v1951_v44, %v718_v4 }
 0x245   :  { %v768_v1 = vpack.c.bf16 %v719_v6, %v717_v5 }
 0x247   :  { %890 = vmatmul.bf16.gmra.mxu3 %v768_v1 }
 0x24a   :  { %v721_v7 = vpop.f32.mrf.mxu2 }
 0x24b   :  { %v722_v9 = vadd.f32 %v1951_v44, %v721_v7 }
 0x252   :  { %v723_v8 = vpop.f32.mrf.mxu2 }
 0x253   :  { %v724_v10 = vadd.f32 %v1951_v44, %v723_v8 }
 0x255   :  { %v769_v11 = vpack.c.bf16 %v724_v10, %v722_v9 }
 0x257   :  { %895 = vmatmul.bf16.gmra.mxu3 %v769_v11 }
 0x25a   :  { %v726_v13 = vpop.f32.mrf.mxu2  ;;  %v856_v14 = vpop.f32.mrf.mxu3 }
 0x25b   :  { %v857_v16 = vadd.f32 %v1983_v15, %v856_v14  ;;  %v727_v19 = vadd.f32 %v1951_v44, %v726_v13 }
 0x25d   :  { %v936_v22 = vmax.f32 %v857_v16, 0.0  ;;  %v1716_v16 = vld [vmem:[#allocation5 + $0x150] sm:$0xff] }
 0x25e   :  { %1266 = vmatpush.bf16.msrb.mxu1 %v1716_v16 }
 0x262   :  { %v728_v17 = vpop.f32.mrf.mxu2  ;;  %v858_v18 = vpop.f32.mrf.mxu3 }
 0x263   :  { %v729_v20 = vadd.f32 %v1951_v44, %v728_v17  ;;  %v859_v21 = vadd.f32 %v1983_v15, %v858_v18 }
 0x265   :  { %v770_v23 = vpack.c.bf16 %v729_v20, %v727_v19  ;;  %v937_v24 = vmax.f32 %v859_v21, 0.0 }
 0x267   :  { %900 = vmatmul.bf16.gmra.mxu3 %v770_v23  ;;  %v968_v26 = vpack.c.bf16 %v937_v24, %v936_v22 }
 0x269   :  { %1062 = vmatmul.bf16.vlgmr.msrb.gmra.mxu0 %v968_v26 }
 0x26a   :  { %v731_v27 = vpop.f32.mrf.mxu2  ;;  %v861_v28 = vpop.f32.mrf.mxu3 }
 0x26b   :  { %v862_v29 = vadd.f32 %v1983_v15, %v861_v28  ;;  %v732_v33 = vadd.f32 %v1951_v44, %v731_v27 }
 0x26d   :  { %v938_v36 = vmax.f32 %v862_v29, 0.0  ;;  %v1715_v29 = vld [vmem:[#allocation5 + $0x148] sm:$0xff] }
 0x26e   :  { %1267 = vmatpush.bf16.msrb.mxu1 %v1715_v29 }
 0x272   :  { %v733_v31 = vpop.f32.mrf.mxu2  ;;  %v863_v32 = vpop.f32.mrf.mxu3 }
 0x273   :  { %v734_v34 = vadd.f32 %v1951_v44, %v733_v31  ;;  %v864_v35 = vadd.f32 %v1983_v15, %v863_v32 }
 0x275   :  { %v771_v37 = vpack.c.bf16 %v734_v34, %v732_v33  ;;  %v939_v38 = vmax.f32 %v864_v35, 0.0 }
 0x277   :  { %905 = vmatmul.bf16.gmra.mxu3 %v771_v37  ;;  %v969_v40 = vpack.c.bf16 %v939_v38, %v938_v36 }
 0x279   :  { %1067 = vmatmul.bf16.gmra.mxu0 %v969_v40 }
 0x27a   :  { %v736_v41 = vpop.f32.mrf.mxu2  ;;  %v866_v42 = vpop.f32.mrf.mxu3 }
 0x27b   :  { %v867_v43 = vadd.f32 %v1983_v15, %v866_v42  ;;  %v737_v47 = vadd.f32 %v1951_v44, %v736_v41 }
 0x27d   :  { %v940_v50 = vmax.f32 %v867_v43, 0.0  ;;  %v1714_v43 = vld [vmem:[#allocation5 + $0x140] sm:$0xff] }
 0x27e   :  { %1268 = vmatpush.bf16.msrb.mxu1 %v1714_v43 }
 0x282   :  { %v738_v45 = vpop.f32.mrf.mxu2  ;;  %v868_v46 = vpop.f32.mrf.mxu3 }
 0x283   :  { %v739_v48 = vadd.f32 %v1951_v44, %v738_v45  ;;  %v869_v49 = vadd.f32 %v1983_v15, %v868_v46 }
 0x285   :  { %v772_v51 = vpack.c.bf16 %v739_v48, %v737_v47  ;;  %v941_v52 = vmax.f32 %v869_v49, 0.0 }
 0x287   :  { %910 = vmatmul.bf16.gmra.mxu3 %v772_v51  ;;  %v970_v53 = vpack.c.bf16 %v941_v52, %v940_v50 }
 0x289   :  { %1072 = vmatmul.bf16.gmra.mxu0 %v970_v53 }
 0x28a   :  { %v741_v55 = vpop.f32.mrf.mxu2  ;;  %v871_v56 = vpop.f32.mrf.mxu3 }
 0x28b   :  { %v872_v57 = vadd.f32 %v1983_v15, %v871_v56  ;;  %v742_v60 = vadd.f32 %v1951_v44, %v741_v55 }
 0x28d   :  { %v942_v63 = vmax.f32 %v872_v57, 0.0 }
 0x292   :  { %v743_v58 = vpop.f32.mrf.mxu2  ;;  %v873_v59 = vpop.f32.mrf.mxu3 }
 0x293   :  { %v744_v61 = vadd.f32 %v1951_v44, %v743_v58  ;;  %v874_v62 = vadd.f32 %v1983_v15, %v873_v59  ;;  %v2017_v59 = vld [vmem:[#allocation7 + $0x4] ss:$0 sm:$0xff] }
 0x295   :  { %v773_v0 = vpack.c.bf16 %v744_v61, %v742_v60  ;;  %v943_v2 = vmax.f32 %v874_v62, 0.0 }
 0x297   :  { %915 = vmatmul.bf16.gmra.mxu3 %v773_v0  ;;  %v971_v30 = vpack.c.bf16 %v943_v2, %v942_v63 }
 0x299   :  { %1077 = vmatmul.bf16.gmra.mxu0 %v971_v30 }
 0x29a   :  { %v746_v4 = vpop.f32.mrf.mxu2  ;;  %v876_v5 = vpop.f32.mrf.mxu3 }
 0x29b   :  { %v877_v6 = vadd.f32 %v1983_v15, %v876_v5  ;;  %v747_v8 = vadd.f32 %v1951_v44, %v746_v4 }
 0x29d   :  { %v944_v11 = vmax.f32 %v877_v6, 0.0 }
 0x2a2   :  { %v748_v1 = vpop.f32.mrf.mxu2  ;;  %v878_v7 = vpop.f32.mrf.mxu3 }
 0x2a3   :  { %v749_v9 = vadd.f32 %v1951_v44, %v748_v1  ;;  %v879_v10 = vadd.f32 %v1983_v15, %v878_v7 }
 0x2a5   :  { %v774_v12 = vpack.c.bf16 %v749_v9, %v747_v8  ;;  %v945_v13 = vmax.f32 %v879_v10, 0.0 }
 0x2a7   :  { %v972_v14 = vpack.c.bf16 %v945_v13, %v944_v11  ;;  %920 = vmatmul.bf16.gmra.mxu3 %v774_v12 }
 0x2a9   :  { %1082 = vmatmul.bf16.gmra.mxu0 %v972_v14 }
 0x2aa   :  { %v751_v17 = vpop.f32.mrf.mxu2  ;;  %v881_v18 = vpop.f32.mrf.mxu3 }
 0x2ab   :  { %v882_v19 = vadd.f32 %v1983_v15, %v881_v18  ;;  %v752_v22 = vadd.f32 %v1951_v44, %v751_v17 }
 0x2ad   :  { %v946_v25 = vmax.f32 %v882_v19, 0.0 }
 0x2b2   :  { %v753_v20 = vpop.f32.mrf.mxu2  ;;  %v883_v21 = vpop.f32.mrf.mxu3 }
 0x2b3   :  { %v754_v23 = vadd.f32 %v1951_v44, %v753_v20  ;;  %v884_v24 = vadd.f32 %v1983_v15, %v883_v21 }
 0x2b5   :  { %v775_v26 = vpack.c.bf16 %v754_v23, %v752_v22  ;;  %v947_v27 = vmax.f32 %v884_v24, 0.0 }
 0x2b7   :  { %v973_v28 = vpack.c.bf16 %v947_v27, %v946_v25  ;;  %925 = vmatmul.bf16.gmra.mxu3 %v775_v26 }
 0x2b9   :  { %1087 = vmatmul.bf16.gmra.mxu0 %v973_v28 }
 0x2ba   :  { %v756_v31 = vpop.f32.mrf.mxu2  ;;  %v886_v32 = vpop.f32.mrf.mxu3 }
 0x2bb   :  { %v887_v33 = vadd.f32 %v1983_v15, %v886_v32  ;;  %v757_v36 = vadd.f32 %v1951_v44, %v756_v31 }
 0x2bd   :  { %v948_v39 = vmax.f32 %v887_v33, 0.0 }
 0x2c2   :  { %v758_v34 = vpop.f32.mrf.mxu2  ;;  %v888_v35 = vpop.f32.mrf.mxu3 }
 0x2c3   :  { %v759_v37 = vadd.f32 %v1951_v44, %v758_v34  ;;  %v889_v38 = vadd.f32 %v1983_v15, %v888_v35 }
 0x2c5   :  { %v776_v40 = vpack.c.bf16 %v759_v37, %v757_v36  ;;  %v949_v41 = vmax.f32 %v889_v38, 0.0 }
 0x2c7   :  { %v974_v42 = vpack.c.bf16 %v949_v41, %v948_v39  ;;  %930 = vmatmul.bf16.gmra.mxu3 %v776_v40 }
 0x2c9   :  { %1092 = vmatmul.bf16.gmra.mxu0 %v974_v42 }
 0x2ca   :  { %v891_v45 = vpop.f32.mrf.mxu3 }
 0x2cb   :  { %v892_v46 = vadd.f32 %v1983_v15, %v891_v45 }
 0x2cd   :  { %v950_v49 = vmax.f32 %v892_v46, 0.0 }
 0x2d2   :  { %v893_v47 = vpop.f32.mrf.mxu3 }
 0x2d3   :  { %v894_v48 = vadd.f32 %v1983_v15, %v893_v47 }
 0x2d5   :  { %v951_v50 = vmax.f32 %v894_v48, 0.0 }
 0x2d7   :  { %v975_v51 = vpack.c.bf16 %v951_v50, %v950_v49 }
 0x2d9   :  { %1097 = vmatmul.bf16.gmra.mxu0 %v975_v51 }
 0x2da   :  { %v896_v44 = vpop.f32.mrf.mxu3 }
 0x2db   :  { %v897_v52 = vadd.f32 %v1983_v15, %v896_v44 }
 0x2dd   :  { %v952_v55 = vmax.f32 %v897_v52, 0.0 }
 0x2e2   :  { %v898_v53 = vpop.f32.mrf.mxu3 }
 0x2e3   :  { %v899_v54 = vadd.f32 %v1983_v15, %v898_v53 }
 0x2e5   :  { %v953_v56 = vmax.f32 %v899_v54, 0.0 }
 0x2e6   :  { %v1063_v57 = vpop.f32.mrf.mxu0 }
 0x2e7   :  { %v976_v58 = vpack.c.bf16 %v953_v56, %v952_v55  ;;  %v1064_v61 = vadd.f32 %v2017_v59, %v1063_v57 }
 0x2e9   :  { %1102 = vmatmul.bf16.gmra.mxu0 %v976_v58  ;;  %v1143_v0 = vmax.f32 %v1064_v61, 0.0 }
 0x2ea   :  { %v901_v60 = vpop.f32.mrf.mxu3 }
 0x2eb   :  { %v902_v2 = vadd.f32 %v1983_v15, %v901_v60 }
 0x2ed   :  { %v954_v6 = vmax.f32 %v902_v2, 0.0 }
 0x2ee   :  { %v1065_v62 = vpop.f32.mrf.mxu0 }
 0x2ef   :  { %v1066_v63 = vadd.f32 %v2017_v59, %v1065_v62 }
 0x2f1   :  { %v1144_v30 = vmax.f32 %v1066_v63, 0.0 }
 0x2f2   :  { %v903_v3 = vpop.f32.mrf.mxu3 }
 0x2f3   :  { %v904_v4 = vadd.f32 %v1983_v15, %v903_v3  ;;  %v1175_v5 = vpack.c.bf16 %v1144_v30, %v1143_v0 }
 0x2f5   :  { %v955_v1 = vmax.f32 %v904_v4, 0.0  ;;  %1269 = vmatmul.bf16.vlgmr.msrb.gmra.mxu1 %v1175_v5 }
 0x2f6   :  { %v1068_v7 = vpop.f32.mrf.mxu0 }
 0x2f7   :  { %v977_v8 = vpack.c.bf16 %v955_v1, %v954_v6  ;;  %v1069_v10 = vadd.f32 %v2017_v59, %v1068_v7 }
 0x2f9   :  { %1107 = vmatmul.bf16.gmra.mxu0 %v977_v8  ;;  %v1145_v13 = vmax.f32 %v1069_v10, 0.0 }
 0x2fa   :  { %v906_v9 = vpop.f32.mrf.mxu3 }
 0x2fb   :  { %v907_v14 = vadd.f32 %v1983_v15, %v906_v9 }
 0x2fd   :  { %v956_v20 = vmax.f32 %v907_v14, 0.0 }
 0x2fe   :  { %v1070_v11 = vpop.f32.mrf.mxu0 }
 0x2ff   :  { %v1071_v12 = vadd.f32 %v2017_v59, %v1070_v11 }
 0x301   :  { %v1146_v16 = vmax.f32 %v1071_v12, 0.0 }
 0x302   :  { %v908_v17 = vpop.f32.mrf.mxu3 }
 0x303   :  { %v909_v18 = vadd.f32 %v1983_v15, %v908_v17  ;;  %v1176_v19 = vpack.c.bf16 %v1146_v16, %v1145_v13 }
 0x305   :  { %v957_v21 = vmax.f32 %v909_v18, 0.0  ;;  %1274 = vmatmul.bf16.gmra.mxu1 %v1176_v19 }
 0x306   :  { %v1073_v22 = vpop.f32.mrf.mxu0 }
 0x307   :  { %v978_v23 = vpack.c.bf16 %v957_v21, %v956_v20  ;;  %v1074_v25 = vadd.f32 %v2017_v59, %v1073_v22 }
 0x309   :  { %1112 = vmatmul.bf16.gmra.mxu0 %v978_v23  ;;  %v1147_v28 = vmax.f32 %v1074_v25, 0.0 }
 0x30a   :  { %v911_v24 = vpop.f32.mrf.mxu3 }
 0x30b   :  { %v912_v29 = vadd.f32 %v1983_v15, %v911_v24 }
 0x30d   :  { %v958_v35 = vmax.f32 %v912_v29, 0.0 }
 0x30e   :  { %v1075_v26 = vpop.f32.mrf.mxu0 }
 0x30f   :  { %v1076_v27 = vadd.f32 %v2017_v59, %v1075_v26 }
 0x311   :  { %v1148_v31 = vmax.f32 %v1076_v27, 0.0 }
 0x312   :  { %v913_v32 = vpop.f32.mrf.mxu3 }
 0x313   :  { %v914_v33 = vadd.f32 %v1983_v15, %v913_v32  ;;  %v1177_v34 = vpack.c.bf16 %v1148_v31, %v1147_v28 }
 0x315   :  { %v959_v36 = vmax.f32 %v914_v33, 0.0  ;;  %1279 = vmatmul.bf16.gmra.mxu1 %v1177_v34 }
 0x316   :  { %v1078_v37 = vpop.f32.mrf.mxu0 }
 0x317   :  { %v979_v38 = vpack.c.bf16 %v959_v36, %v958_v35  ;;  %v1079_v40 = vadd.f32 %v2017_v59, %v1078_v37 }
 0x319   :  { %1117 = vmatmul.bf16.gmra.mxu0 %v979_v38  ;;  %v1149_v43 = vmax.f32 %v1079_v40, 0.0 }
 0x31a   :  { %v916_v39 = vpop.f32.mrf.mxu3 }
 0x31b   :  { %v917_v45 = vadd.f32 %v1983_v15, %v916_v39 }
 0x31d   :  { %v960_v50 = vmax.f32 %v917_v45, 0.0 }
 0x31e   :  { %v1080_v41 = vpop.f32.mrf.mxu0 }
 0x31f   :  { %v1081_v42 = vadd.f32 %v2017_v59, %v1080_v41 }
 0x321   :  { %v1150_v46 = vmax.f32 %v1081_v42, 0.0  ;;  %v2051_v42 = vld [vmem:[#allocation7 + $0x5] ss:$0 sm:$0xff] }
 0x322   :  { %v918_v47 = vpop.f32.mrf.mxu3 }
 0x323   :  { %v919_v48 = vadd.f32 %v1983_v15, %v918_v47  ;;  %v1178_v49 = vpack.c.bf16 %v1150_v46, %v1149_v43 }
 0x325   :  { %v961_v51 = vmax.f32 %v919_v48, 0.0  ;;  %1284 = vmatmul.bf16.gmra.mxu1 %v1178_v49 }
 0x326   :  { %v1083_v44 = vpop.f32.mrf.mxu0 }
 0x327   :  { %v980_v52 = vpack.c.bf16 %v961_v51, %v960_v50  ;;  %v1084_v54 = vadd.f32 %v2017_v59, %v1083_v44 }
 0x329   :  { %1122 = vmatmul.bf16.gmra.mxu0 %v980_v52  ;;  %v1151_v57 = vmax.f32 %v1084_v54, 0.0 }
 0x32a   :  { %v921_v53 = vpop.f32.mrf.mxu3 }
 0x32b   :  { %v922_v58 = vadd.f32 %v1983_v15, %v921_v53 }
 0x32d   :  { %v962_v0 = vmax.f32 %v922_v58, 0.0 }
 0x32e   :  { %v1085_v55 = vpop.f32.mrf.mxu0 }
 0x32f   :  { %v1086_v56 = vadd.f32 %v2017_v59, %v1085_v55 }
 0x331   :  { %v1152_v60 = vmax.f32 %v1086_v56, 0.0 }
 0x332   :  { %v923_v61 = vpop.f32.mrf.mxu3 }
 0x333   :  { %v1179_v62 = vpack.c.bf16 %v1152_v60, %v1151_v57  ;;  %v924_v63 = vadd.f32 %v1983_v15, %v923_v61 }
 0x335   :  { %v963_v2 = vmax.f32 %v924_v63, 0.0  ;;  %1289 = vmatmul.bf16.gmra.mxu1 %v1179_v62 }
 0x336   :  { %v1088_v30 = vpop.f32.mrf.mxu0 }
 0x337   :  { %v981_v3 = vpack.c.bf16 %v963_v2, %v962_v0  ;;  %v1089_v5 = vadd.f32 %v2017_v59, %v1088_v30 }
 0x339   :  { %1127 = vmatmul.bf16.gmra.mxu0 %v981_v3  ;;  %v1153_v7 = vmax.f32 %v1089_v5, 0.0 }
 0x33a   :  { %v926_v4 = vpop.f32.mrf.mxu3 }
 0x33b   :  { %v927_v8 = vadd.f32 %v1983_v15, %v926_v4 }
 0x33d   :  { %v964_v13 = vmax.f32 %v927_v8, 0.0 }
 0x33e   :  { %v1090_v6 = vpop.f32.mrf.mxu0 }
 0x33f   :  { %v1091_v1 = vadd.f32 %v2017_v59, %v1090_v6 }
 0x341   :  { %v1154_v9 = vmax.f32 %v1091_v1, 0.0 }
 0x342   :  { %v928_v10 = vpop.f32.mrf.mxu3 }
 0x343   :  { %v1180_v11 = vpack.c.bf16 %v1154_v9, %v1153_v7  ;;  %v929_v12 = vadd.f32 %v1983_v15, %v928_v10 }
 0x345   :  { %v965_v14 = vmax.f32 %v929_v12, 0.0  ;;  %1294 = vmatmul.bf16.gmra.mxu1 %v1180_v11 }
 0x346   :  { %v1093_v16 = vpop.f32.mrf.mxu0 }
 0x347   :  { %v982_v17 = vpack.c.bf16 %v965_v14, %v964_v13  ;;  %v1094_v19 = vadd.f32 %v2017_v59, %v1093_v16 }
 0x349   :  { %1132 = vmatmul.bf16.gmra.mxu0 %v982_v17  ;;  %v1155_v22 = vmax.f32 %v1094_v19, 0.0 }
 0x34a   :  { %v931_v18 = vpop.f32.mrf.mxu3 }
 0x34b   :  { %v932_v23 = vadd.f32 %v1983_v15, %v931_v18 }
 0x34d   :  { %v966_v28 = vmax.f32 %v932_v23, 0.0 }
 0x34e   :  { %v1095_v20 = vpop.f32.mrf.mxu0 }
 0x34f   :  { %v1096_v21 = vadd.f32 %v2017_v59, %v1095_v20 }
 0x351   :  { %v1156_v24 = vmax.f32 %v1096_v21, 0.0 }
 0x352   :  { %v933_v25 = vpop.f32.mrf.mxu3 }
 0x353   :  { %v1181_v26 = vpack.c.bf16 %v1156_v24, %v1155_v22  ;;  %v934_v27 = vadd.f32 %v1983_v15, %v933_v25 }
 0x355   :  { %v967_v29 = vmax.f32 %v934_v27, 0.0  ;;  %1299 = vmatmul.bf16.gmra.mxu1 %v1181_v26 }
 0x356   :  { %v1098_v31 = vpop.f32.mrf.mxu0 }
 0x357   :  { %v983_v32 = vpack.c.bf16 %v967_v29, %v966_v28  ;;  %v1099_v33 = vadd.f32 %v2017_v59, %v1098_v31 }
 0x359   :  { %1137 = vmatmul.bf16.gmra.mxu0 %v983_v32  ;;  %v1157_v36 = vmax.f32 %v1099_v33, 0.0 }
 0x35e   :  { %v1100_v34 = vpop.f32.mrf.mxu0 }
 0x35f   :  { %v1101_v35 = vadd.f32 %v2017_v59, %v1100_v34 }
 0x361   :  { %v1158_v37 = vmax.f32 %v1101_v35, 0.0 }
 0x363   :  { %v1182_v38 = vpack.c.bf16 %v1158_v37, %v1157_v36 }
 0x365   :  { %1304 = vmatmul.bf16.gmra.mxu1 %v1182_v38 }
 0x366   :  { %v1103_v39 = vpop.f32.mrf.mxu0 }
 0x367   :  { %v1104_v40 = vadd.f32 %v2017_v59, %v1103_v39 }
 0x369   :  { %v1159_v43 = vmax.f32 %v1104_v40, 0.0 }
 0x36e   :  { %v1105_v41 = vpop.f32.mrf.mxu0 }
 0x36f   :  { %v1106_v15 = vadd.f32 %v2017_v59, %v1105_v41 }
 0x371   :  { %v1160_v45 = vmax.f32 %v1106_v15, 0.0 }
 0x372   :  { %v1270_v46 = vpop.f32.mrf.mxu1 }
 0x373   :  { %v1183_v47 = vpack.c.bf16 %v1160_v45, %v1159_v43  ;;  %v1271_v48 = vadd.f32 %v2051_v42, %v1270_v46 }
 0x375   :  { %1350 = vst [vmem:[#allocation8] sm:$0xff] %v1271_v48  ;;  %1309 = vmatmul.bf16.gmra.mxu1 %v1183_v47 }
 0x376   :  { %v1108_v49 = vpop.f32.mrf.mxu0 }
 0x377   :  { %v1109_v44 = vadd.f32 %v2017_v59, %v1108_v49 }
 0x379   :  { %v1161_v54 = vmax.f32 %v1109_v44, 0.0 }
 0x37a   :  { %v1272_v50 = vpop.f32.mrf.mxu1 }
 0x37b   :  { %v1273_v51 = vadd.f32 %v2051_v42, %v1272_v50 }
 0x37d   :  { %1351 = vst [vmem:[#allocation8 + $0x8] sm:$0xff] %v1273_v51 }
 0x37e   :  { %v1110_v52 = vpop.f32.mrf.mxu0 }
 0x37f   :  { %v1111_v53 = vadd.f32 %v2017_v59, %v1110_v52 }
 0x381   :  { %v1162_v55 = vmax.f32 %v1111_v53, 0.0 }
 0x382   :  { %v1275_v56 = vpop.f32.mrf.mxu1 }
 0x383   :  { %v1184_v57 = vpack.c.bf16 %v1162_v55, %v1161_v54  ;;  %v1276_v58 = vadd.f32 %v2051_v42, %v1275_v56 }
 0x385   :  { %1352 = vst [vmem:[#allocation8 + $0x10] sm:$0xff] %v1276_v58  ;;  %1314 = vmatmul.bf16.gmra.mxu1 %v1184_v57 }
 0x386   :  { %v1113_v60 = vpop.f32.mrf.mxu0 }
 0x387   :  { %v1114_v63 = vadd.f32 %v2017_v59, %v1113_v60 }
 0x389   :  { %v1163_v30 = vmax.f32 %v1114_v63, 0.0 }
 0x38a   :  { %v1277_v61 = vpop.f32.mrf.mxu1 }
 0x38b   :  { %v1278_v62 = vadd.f32 %v2051_v42, %v1277_v61 }
 0x38d   :  { %1353 = vst [vmem:[#allocation8 + $0x18] sm:$0xff] %v1278_v62 }
 0x38e   :  { %v1115_v0 = vpop.f32.mrf.mxu0 }
 0x38f   :  { %v1116_v2 = vadd.f32 %v2017_v59, %v1115_v0 }
 0x391   :  { %v1164_v3 = vmax.f32 %v1116_v2, 0.0 }
 0x392   :  { %v1280_v4 = vpop.f32.mrf.mxu1 }
 0x393   :  { %v1185_v5 = vpack.c.bf16 %v1164_v3, %v1163_v30  ;;  %v1281_v6 = vadd.f32 %v2051_v42, %v1280_v4 }
 0x395   :  { %1354 = vst [vmem:[#allocation8 + $0x20] sm:$0xff] %v1281_v6  ;;  %1319 = vmatmul.bf16.gmra.mxu1 %v1185_v5 }
 0x396   :  { %v1118_v1 = vpop.f32.mrf.mxu0 }
 0x397   :  { %v1119_v9 = vadd.f32 %v2017_v59, %v1118_v1 }
 0x399   :  { %v1165_v12 = vmax.f32 %v1119_v9, 0.0 }
 0x39a   :  { %v1282_v7 = vpop.f32.mrf.mxu1 }
 0x39b   :  { %v1283_v8 = vadd.f32 %v2051_v42, %v1282_v7 }
 0x39d   :  { %1355 = vst [vmem:[#allocation8 + $0x28] sm:$0xff] %v1283_v8 }
 0x39e   :  { %v1120_v10 = vpop.f32.mrf.mxu0 }
 0x39f   :  { %v1121_v11 = vadd.f32 %v2017_v59, %v1120_v10 }
 0x3a1   :  { %v1166_v13 = vmax.f32 %v1121_v11, 0.0 }
 0x3a2   :  { %v1285_v14 = vpop.f32.mrf.mxu1 }
 0x3a3   :  { %v1186_v16 = vpack.c.bf16 %v1166_v13, %v1165_v12  ;;  %v1286_v17 = vadd.f32 %v2051_v42, %v1285_v14 }
 0x3a5   :  { %1356 = vst [vmem:[#allocation8 + $0x30] sm:$0xff] %v1286_v17  ;;  %1324 = vmatmul.bf16.gmra.mxu1 %v1186_v16 }
 0x3a6   :  { %v1123_v18 = vpop.f32.mrf.mxu0 }
 0x3a7   :  { %v1124_v21 = vadd.f32 %v2017_v59, %v1123_v18 }
 0x3a9   :  { %v1167_v24 = vmax.f32 %v1124_v21, 0.0 }
 0x3aa   :  { %v1287_v19 = vpop.f32.mrf.mxu1 }
 0x3ab   :  { %v1288_v20 = vadd.f32 %v2051_v42, %v1287_v19 }
 0x3ad   :  { %1357 = vst [vmem:[#allocation8 + $0x38] sm:$0xff] %v1288_v20 }
 0x3ae   :  { %v1125_v22 = vpop.f32.mrf.mxu0 }
 0x3af   :  { %v1126_v23 = vadd.f32 %v2017_v59, %v1125_v22 }
 0x3b1   :  { %v1168_v25 = vmax.f32 %v1126_v23, 0.0 }
 0x3b2   :  { %v1290_v26 = vpop.f32.mrf.mxu1 }
 0x3b3   :  { %v1187_v27 = vpack.c.bf16 %v1168_v25, %v1167_v24  ;;  %v1291_v28 = vadd.f32 %v2051_v42, %v1290_v26 }
 0x3b5   :  { %1358 = vst [vmem:[#allocation8 + $0x40] sm:$0xff] %v1291_v28  ;;  %1329 = vmatmul.bf16.gmra.mxu1 %v1187_v27 }
 0x3b6   :  { %v1128_v29 = vpop.f32.mrf.mxu0 }
 0x3b7   :  { %v1129_v33 = vadd.f32 %v2017_v59, %v1128_v29 }
 0x3b9   :  { %v1169_v36 = vmax.f32 %v1129_v33, 0.0 }
 0x3ba   :  { %v1292_v31 = vpop.f32.mrf.mxu1 }
 0x3bb   :  { %v1293_v32 = vadd.f32 %v2051_v42, %v1292_v31 }
 0x3bd   :  { %1359 = vst [vmem:[#allocation8 + $0x48] sm:$0xff] %v1293_v32 }
 0x3be   :  { %v1130_v34 = vpop.f32.mrf.mxu0 }
 0x3bf   :  { %v1131_v35 = vadd.f32 %v2017_v59, %v1130_v34 }
 0x3c1   :  { %v1170_v37 = vmax.f32 %v1131_v35, 0.0 }
 0x3c2   :  { %v1295_v38 = vpop.f32.mrf.mxu1 }
 0x3c3   :  { %v1188_v39 = vpack.c.bf16 %v1170_v37, %v1169_v36  ;;  %v1296_v40 = vadd.f32 %v2051_v42, %v1295_v38 }
 0x3c5   :  { %1360 = vst [vmem:[#allocation8 + $0x50] sm:$0xff] %v1296_v40  ;;  %1334 = vmatmul.bf16.gmra.mxu1 %v1188_v39 }
 0x3c6   :  { %v1133_v41 = vpop.f32.mrf.mxu0 }
 0x3c7   :  { %v1134_v45 = vadd.f32 %v2017_v59, %v1133_v41 }
 0x3c9   :  { %v1171_v48 = vmax.f32 %v1134_v45, 0.0 }
 0x3ca   :  { %v1297_v15 = vpop.f32.mrf.mxu1 }
 0x3cb   :  { %v1298_v43 = vadd.f32 %v2051_v42, %v1297_v15 }
 0x3cd   :  { %1361 = vst [vmem:[#allocation8 + $0x58] sm:$0xff] %v1298_v43 }
 0x3ce   :  { %v1135_v46 = vpop.f32.mrf.mxu0 }
 0x3cf   :  { %v1136_v47 = vadd.f32 %v2017_v59, %v1135_v46 }
 0x3d1   :  { %v1172_v49 = vmax.f32 %v1136_v47, 0.0 }
 0x3d2   :  { %v1300_v50 = vpop.f32.mrf.mxu1 }
 0x3d3   :  { %v1189_v51 = vpack.c.bf16 %v1172_v49, %v1171_v48  ;;  %v1301_v44 = vadd.f32 %v2051_v42, %v1300_v50 }
 0x3d5   :  { %1362 = vst [vmem:[#allocation8 + $0x60] sm:$0xff] %v1301_v44  ;;  %1339 = vmatmul.bf16.gmra.mxu1 %v1189_v51 }
 0x3d6   :  { %v1138_v52 = vpop.f32.mrf.mxu0 }
 0x3d7   :  { %v1139_v55 = vadd.f32 %v2017_v59, %v1138_v52 }
 0x3d9   :  { %v1173_v58 = vmax.f32 %v1139_v55, 0.0 }
 0x3da   :  { %v1302_v53 = vpop.f32.mrf.mxu1 }
 0x3db   :  { %v1303_v54 = vadd.f32 %v2051_v42, %v1302_v53 }
 0x3dd   :  { %1363 = vst [vmem:[#allocation8 + $0x68] sm:$0xff] %v1303_v54 }
 0x3de   :  { %v1140_v56 = vpop.f32.mrf.mxu0 }
 0x3df   :  { %v1141_v57 = vadd.f32 %v2017_v59, %v1140_v56 }
 0x3e1   :  { %v1174_v60 = vmax.f32 %v1141_v57, 0.0 }
 0x3e2   :  { %v1305_v61 = vpop.f32.mrf.mxu1 }
 0x3e3   :  { %v1190_v62 = vpack.c.bf16 %v1174_v60, %v1173_v58  ;;  %v1306_v63 = vadd.f32 %v2051_v42, %v1305_v61 }
 0x3e5   :  { %1364 = vst [vmem:[#allocation8 + $0x70] sm:$0xff] %v1306_v63  ;;  %1344 = vmatmul.bf16.gmra.mxu1 %v1190_v62 }
 0x3ea   :  { %v1307_v0 = vpop.f32.mrf.mxu1 }
 0x3eb   :  { %v1308_v2 = vadd.f32 %v2051_v42, %v1307_v0 }
 0x3ed   :  { %1365 = vst [vmem:[#allocation8 + $0x78] sm:$0xff] %v1308_v2 }
 0x3f2   :  { %v1310_v30 = vpop.f32.mrf.mxu1 }
 0x3f3   :  { %v1311_v3 = vadd.f32 %v2051_v42, %v1310_v30 }
 0x3f5   :  { %1366 = vst [vmem:[#allocation8 + $0x80] sm:$0xff] %v1311_v3 }
 0x3fa   :  { %v1312_v4 = vpop.f32.mrf.mxu1 }
 0x3fb   :  { %v1313_v5 = vadd.f32 %v2051_v42, %v1312_v4 }
 0x3fd   :  { %1367 = vst [vmem:[#allocation8 + $0x88] sm:$0xff] %v1313_v5 }
 0x402   :  { %v1315_v59 = vpop.f32.mrf.mxu1 }
 0x403   :  { %v1316_v6 = vadd.f32 %v2051_v42, %v1315_v59 }
 0x405   :  { %1368 = vst [vmem:[#allocation8 + $0x90] sm:$0xff] %v1316_v6 }
 0x40a   :  { %v1317_v1 = vpop.f32.mrf.mxu1 }
 0x40b   :  { %v1318_v7 = vadd.f32 %v2051_v42, %v1317_v1 }
 0x40d   :  { %1369 = vst [vmem:[#allocation8 + $0x98] sm:$0xff] %v1318_v7 }
 0x412   :  { %v1320_v8 = vpop.f32.mrf.mxu1 }
 0x413   :  { %v1321_v9 = vadd.f32 %v2051_v42, %v1320_v8 }
 0x415   :  { %1370 = vst [vmem:[#allocation8 + $0xa0] sm:$0xff] %v1321_v9 }
 0x41a   :  { %v1322_v10 = vpop.f32.mrf.mxu1 }
 0x41b   :  { %v1323_v11 = vadd.f32 %v2051_v42, %v1322_v10 }
 0x41d   :  { %1371 = vst [vmem:[#allocation8 + $0xa8] sm:$0xff] %v1323_v11 }
 0x422   :  { %v1325_v12 = vpop.f32.mrf.mxu1 }
 0x423   :  { %v1326_v13 = vadd.f32 %v2051_v42, %v1325_v12 }
 0x425   :  { %1372 = vst [vmem:[#allocation8 + $0xb0] sm:$0xff] %v1326_v13 }
 0x42a   :  { %v1327_v14 = vpop.f32.mrf.mxu1 }
 0x42b   :  { %v1328_v16 = vadd.f32 %v2051_v42, %v1327_v14 }
 0x42d   :  { %1373 = vst [vmem:[#allocation8 + $0xb8] sm:$0xff] %v1328_v16 }
 0x432   :  { %v1330_v17 = vpop.f32.mrf.mxu1 }
 0x433   :  { %v1331_v18 = vadd.f32 %v2051_v42, %v1330_v17 }
 0x435   :  { %1374 = vst [vmem:[#allocation8 + $0xc0] sm:$0xff] %v1331_v18 }
 0x43a   :  { %v1332_v19 = vpop.f32.mrf.mxu1 }
 0x43b   :  { %v1333_v20 = vadd.f32 %v2051_v42, %v1332_v19 }
 0x43d   :  { %1375 = vst [vmem:[#allocation8 + $0xc8] sm:$0xff] %v1333_v20 }
 0x442   :  { %v1335_v21 = vpop.f32.mrf.mxu1 }
 0x443   :  { %v1336_v22 = vadd.f32 %v2051_v42, %v1335_v21 }
 0x445   :  { %1376 = vst [vmem:[#allocation8 + $0xd0] sm:$0xff] %v1336_v22 }
 0x44a   :  { %v1337_v23 = vpop.f32.mrf.mxu1 }
 0x44b   :  { %v1338_v24 = vadd.f32 %v2051_v42, %v1337_v23 }
 0x44d   :  { %1377 = vst [vmem:[#allocation8 + $0xd8] sm:$0xff] %v1338_v24 }
 0x452   :  { %v1340_v25 = vpop.f32.mrf.mxu1 }
 0x453   :  { %v1341_v26 = vadd.f32 %v2051_v42, %v1340_v25 }
 0x455   :  { %1378 = vst [vmem:[#allocation8 + $0xe0] sm:$0xff] %v1341_v26 }
 0x45a   :  { %v1342_v27 = vpop.f32.mrf.mxu1 }
 0x45b   :  { %v1343_v28 = vadd.f32 %v2051_v42, %v1342_v27 }
 0x45d   :  { %1379 = vst [vmem:[#allocation8 + $0xe8] sm:$0xff] %v1343_v28 }
 0x462   :  { %v1345_v29 = vpop.f32.mrf.mxu1 }
 0x463   :  { %v1346_v31 = vadd.f32 %v2051_v42, %v1345_v29 }
 0x465   :  { %1380 = vst [vmem:[#allocation8 + $0xf0] sm:$0xff] %v1346_v31 }
 0x46a   :  { %v1347_v32 = vpop.f32.mrf.mxu1 }
 0x46b   :  { %v1348_v33 = vadd.f32 %v2051_v42, %v1347_v32 }
 0x46d   :  { %1381 = vst [vmem:[#allocation8 + $0xf8] sm:$0xff] %v1348_v33 }
 0x46e   :  { %1394 = dma.vmem_to_hbm [thread:$0]  %s1387_s2, 4096, %s1389_s5, [#allocation4], %s1864_s6, %s1864_s6, %s1865_s7  }
 0x46f   :  { %1854 = dma.done.wait [#allocation4], 4096  }
 0x470   :  { %1855 = vsyncadd [#allocation4], 4294963200 }
 0x471   :  { %1399 = vsyncpa [#allocation3], 1 }
 0x472   :  { %1400 = vsyncpa [#allocation6], 1 }
 0x473   :  { %1401 = vsyncpa [#allocation4], 1 }

</bundles_post_ra>
